<compile_context>
chip_gen: v7x
topology: tpu7x:2x2x1
jax: 0.10.0
libtpu: 0.0.40
codegen_flags: <defaults>
</compile_context>

<pallas_src>
import functools
import math

import jax
import jax.numpy as jnp
from jax import lax
from jax.experimental import pallas as pl
from jax.experimental.pallas import tpu as pltpu


def _selective_attention_kernel(x_ref, wkv_ref, bkv_ref, wcls_ref, bcls_ref,
                                g_ref, e_ref, worep_ref, bo_ref,
                                out_ref, attn_ref, *, S, D, H):
    """Processes a (BB, S*D) lane-major block of batch rows.

    Lane layouts (all 2-D, batch on sublanes):
      x / k2 / v2 / out : lane = token*D + feature
      s2 / a2 (attn)    : lane = token*H + head
    """
    x = x_ref[...]                                                    # (BB, S*D)

    # ---- fused K / V projections for every token of every batch row --------
    # One matmul against block-diagonal [Wk | Wv]: all BB*S token projections
    # share a single MXU call with M = BB rows.
    kv = jnp.dot(x, wkv_ref[...], preferred_element_type=jnp.float32)
    kv = kv + bkv_ref[...]                                            # (BB, 2*S*D)
    k2 = kv[:, :S * D]                                                # (BB, S*D)
    v2 = kv[:, S * D:]                                                # (BB, S*D)

    # ---- CLS-row features: scaled query + fused (v_proj o out_proj) --------
    # wcls = [wq.T / sqrt(dh) | wv.T @ wo.T]; rows i>0 of the attention output
    # are exactly v[:, 0, :], so their output projection collapses to one
    # (BB, D) x (D, D) matmul on the CLS features.
    cls_mm = jnp.dot(x[:, :D], wcls_ref[...],
                     preferred_element_type=jnp.float32) + bcls_ref[...]
    q0s = cls_mm[:, :D]                                               # (BB, D)
    out_rest = cls_mm[:, D:]                                          # (BB, D)

    # ---- CLS-row scores for all heads: s2[b, j*H + h] -----------------------
    q0_tile = jnp.concatenate([q0s] * S, axis=1)                      # (BB, S*D)
    s2 = jnp.dot(q0_tile * k2, g_ref[...],
                 preferred_element_type=jnp.float32)                  # (BB, S*H)
    # mask the (CLS, CLS) entry: token j == 0  <=>  lane < H
    lane = lax.broadcasted_iota(jnp.int32, s2.shape, 1)
    s2 = jnp.where(lane < H, jnp.float32(-1e30), s2)

    # ---- per-(batch, head) softmax over the S key positions -----------------
    # Static H-lane slices: no segmented / cross-lane reductions needed.
    m = s2[:, 0:H]
    for j in range(1, S):
        m = jnp.maximum(m, s2[:, j * H:(j + 1) * H])
    p = jnp.exp(s2 - jnp.concatenate([m] * S, axis=1))                # masked -> 0
    l = p[:, 0:H]
    for j in range(1, S):
        l = l + p[:, j * H:(j + 1) * H]
    a2 = p / jnp.concatenate([l] * S, axis=1)                         # (BB, S*H)

    # ---- CLS-row output, fused with the output projection -------------------
    # a_exp[b, j*D + h*dh + d] = a2[b, j*H + h];  out_cls = (a_exp * v2) @ tile(wo.T)
    a_exp = jnp.dot(a2, e_ref[...], preferred_element_type=jnp.float32)   # (BB, S*D)
    out_cls = jnp.dot(a_exp * v2, worep_ref[...],
                      preferred_element_type=jnp.float32) + bo_ref[...]   # (BB, D)

    # ---- single lane-dense stores --------------------------------------------
    out_ref[...] = jnp.concatenate([out_cls] + [out_rest] * (S - 1),
                                   axis=1).astype(out_ref.dtype)
    attn_ref[...] = a2.astype(attn_ref.dtype)
    # TODO(synk): attention-weight dropout and the optional runtime `mask`
    # argument of forward() are not implemented (inference / eval mode only).


def selective_attention(x, params, n_heads, *, block_batch=32):
    """FTT+ SelectiveAttention forward.  x: (B, S, D).  Returns (out, attn)."""
    B, S, D = x.shape
    assert D % n_heads == 0, "d_model must be divisible by n_heads"
    assert S >= 2, "selective mask needs at least the CLS token + one feature"
    H = n_heads
    dh = D // H
    scale = 1.0 / math.sqrt(dh)
    wq, bq, wk, bk, wv, bv, wo, bo = params       # weights (out, in), biases (D,)
    f32 = jnp.float32

    # ---- host-side packing (batch independent) -------------------------------
    eye = jnp.eye(S, dtype=f32)
    w_kv = jnp.concatenate([jnp.kron(eye, wk.T), jnp.kron(eye, wv.T)], axis=1)
    b_kv = jnp.concatenate([jnp.tile(bk, S), jnp.tile(bv, S)]).reshape(1, 2 * S * D)
    w_cls = jnp.concatenate([wq.T * scale, wv.T @ wo.T], axis=1)       # (D, 2D)
    b_cls = jnp.concatenate([bq * scale, bv @ wo.T + bo]).reshape(1, 2 * D)
    r = jnp.arange(S * D)[:, None]
    c = jnp.arange(S * H)[None, :]
    g = ((r // D == c // H) & ((r % D) // dh == c % H)).astype(f32)    # (S*D, S*H)
    e = g.T                                                            # (S*H, S*D)
    wo_rep = jnp.tile(wo.T, (S, 1))                                    # (S*D, D)
    bo2 = bo.reshape(1, D)

    # ---- batch tiling: bb batch rows per grid step ----------------------------
    # bb is a sublane multiple of 8, capped at block_batch; once B >= 16 the grid
    # has >= 2 steps so a v7x chip (2 TensorCores, "parallel" axis) splits evenly.
    bb = min(block_batch, max(8, 8 * ((B + 15) // 16)))
    nb = -(-B // bb)
    b_pad = nb * bb
    x2 = x.reshape(B, S * D).astype(f32)
    if b_pad != B:
        x2 = jnp.pad(x2, ((0, b_pad - B), (0, 0)))

    kernel = functools.partial(_selective_attention_kernel, S=S, D=D, H=H)
    const = lambda i: (0, 0)
    out_flat, a2 = pl.pallas_call(
        kernel,
        out_shape=(jax.ShapeDtypeStruct((b_pad, S * D), x.dtype),
                   jax.ShapeDtypeStruct((b_pad, S * H), jnp.float32)),
        grid=(nb,),
        in_specs=[
            pl.BlockSpec((bb, S * D), lambda i: (i, 0)),   # x, lane-major tokens
            pl.BlockSpec((S * D, 2 * S * D), const),       # block-diag [Wk | Wv]
            pl.BlockSpec((1, 2 * S * D), const),           # [bk | bv] tiled
            pl.BlockSpec((D, 2 * D), const),               # [Wq*scale | Wv@Wo]
            pl.BlockSpec((1, 2 * D), const),
            pl.BlockSpec((S * D, S * H), const),           # head/token indicator G
            pl.BlockSpec((S * H, S * D), const),           # G.T (canonical orient.)
            pl.BlockSpec((S * D, D), const),               # Wo.T tiled over tokens
            pl.BlockSpec((1, D), const),
        ],
        out_specs=(pl.BlockSpec((bb, S * D), lambda i: (i, 0)),
                   pl.BlockSpec((bb, S * H), lambda i: (i, 0))),
        compiler_params=pltpu.CompilerParams(
            dimension_semantics=("parallel",)),
    )(x2, w_kv, b_kv, w_cls, b_cls, g, e, wo_rep, bo2)

    out = out_flat[:B].reshape(B, S, D)
    # CLS-row weights come back lane-ordered as token*H + head.
    cls_rows = a2[:B].reshape(B, S, H).transpose(0, 2, 1)              # (B, H, S)
    row = jnp.arange(S)[:, None]
    col = jnp.arange(S)[None, :]
    base = ((row > 0) & (col == 0)).astype(jnp.float32)   # rows i>0: one-hot @ CLS
    attn = jnp.broadcast_to(base, (B, H, S, S))
    attn = attn.at[:, :, 0, :].set(cls_rows)
    return out, attn


def reference_selective_attention(x, params, n_heads):
    """Pure-JAX reference mirroring the PyTorch forward (eval mode)."""
    wq, bq, wk, bk, wv, bv, wo, bo = params
    B, S, D = x.shape
    dh = D // n_heads

    def lin(w, b):
        return x @ w.T + b

    def heads(t):
        return t.reshape(B, S, n_heads, dh).transpose(0, 2, 1, 3)

    q, k, v = heads(lin(wq, bq)), heads(lin(wk, bk)), heads(lin(wv, bv))
    s = jnp.einsum('bhqd,bhkd->bhqk', q, k) / math.sqrt(dh)
    row = jnp.arange(S)[:, None]
    col = jnp.arange(S)[None, :]
    allowed = ((row == 0) | (col == 0)) & (row != col)
    s = jnp.where(allowed, s, -jnp.inf)
    a = jax.nn.softmax(s, axis=-1)
    o = jnp.einsum('bhqk,bhkd->bhqd', a, v).transpose(0, 2, 1, 3).reshape(B, S, D)
    return o @ wo.T + bo, a


if __name__ == "__main__":
    B, S, D, H = 2, 9, 32, 4          # seq_len = 1 CLS token + 8 features
    key = jax.random.PRNGKey(0)
    kx, kq, kk, kv, ko = jax.random.split(key, 5)

    x = jax.random.normal(kx, (B, S, D), jnp.float32)

    # Deterministic "kaiming_normal_" style init: std = sqrt(2 / fan_in), zero biases.
    std = math.sqrt(2.0 / D)
    wq = jax.random.normal(kq, (D, D), jnp.float32) * std
    wk = jax.random.normal(kk, (D, D), jnp.float32) * std
    wv = jax.random.normal(kv, (D, D), jnp.float32) * std
    wo = jax.random.normal(ko, (D, D), jnp.float32) * std
    bq = jnp.zeros((D,), jnp.float32)
    bk = jnp.zeros((D,), jnp.float32)
    bv = jnp.zeros((D,), jnp.float32)
    bo = jnp.zeros((D,), jnp.float32)
    params = (wq, bq, wk, bk, wv, bv, wo, bo)

    out, attn = selective_attention(x, params, H)
    out, attn = jax.block_until_ready((out, attn))

    ref_out, ref_attn = reference_selective_attention(x, params, H)
    assert out.shape == (B, S, D) and attn.shape == (B, H, S, S)
    assert jnp.allclose(out, ref_out, atol=1e-4, rtol=1e-4), "output mismatch"
    assert jnp.allclose(attn, ref_attn, atol=1e-5, rtol=1e-5), "attn mismatch"

    print("KERNEL_OK")
</pallas_src>

<mosaic_0001>
module attributes {stable_mosaic.version = 11 : i64} {
  func.func @_selective_attention_kernel(%arg0: i32, %arg1: memref<8x288xf32, #tpu.memory_space<vmem>>, %arg2: memref<288x576xf32, #tpu.memory_space<vmem>>, %arg3: memref<1x576xf32, #tpu.memory_space<vmem>>, %arg4: memref<32x64xf32, #tpu.memory_space<vmem>>, %arg5: memref<1x64xf32, #tpu.memory_space<vmem>>, %arg6: memref<288x36xf32, #tpu.memory_space<vmem>>, %arg7: memref<36x288xf32, #tpu.memory_space<vmem>>, %arg8: memref<288x32xf32, #tpu.memory_space<vmem>>, %arg9: memref<1x32xf32, #tpu.memory_space<vmem>>, %arg10: memref<8x288xf32, #tpu.memory_space<vmem>>, %arg11: memref<8x36xf32, #tpu.memory_space<vmem>>) attributes {dimension_semantics = [#tpu.dimension_semantics<parallel>], iteration_bounds = array<i64: 1>, scalar_prefetch = 0 : i64, scratch_operands = 0 : i64, tpu.core_type = #tpu.core_type<tc>, window_params = [{transform_indices = @transform_0, window_bounds = array<i64: 8, 288>}, {pipeline_mode = #tpu.pipeline_mode<synchronous>, transform_indices = @transform_1, window_bounds = array<i64: 288, 576>}, {pipeline_mode = #tpu.pipeline_mode<synchronous>, transform_indices = @transform_2, window_bounds = array<i64: 1, 576>}, {pipeline_mode = #tpu.pipeline_mode<synchronous>, transform_indices = @transform_3, window_bounds = array<i64: 32, 64>}, {pipeline_mode = #tpu.pipeline_mode<synchronous>, transform_indices = @transform_4, window_bounds = array<i64: 1, 64>}, {pipeline_mode = #tpu.pipeline_mode<synchronous>, transform_indices = @transform_5, window_bounds = array<i64: 288, 36>}, {pipeline_mode = #tpu.pipeline_mode<synchronous>, transform_indices = @transform_6, window_bounds = array<i64: 36, 288>}, {pipeline_mode = #tpu.pipeline_mode<synchronous>, transform_indices = @transform_7, window_bounds = array<i64: 288, 32>}, {pipeline_mode = #tpu.pipeline_mode<synchronous>, transform_indices = @transform_8, window_bounds = array<i64: 1, 32>}, {transform_indices = @transform_9, window_bounds = array<i64: 8, 288>}, {transform_indices = @transform_10, window_bounds = array<i64: 8, 36>}]} {
    %c0 = arith.constant 0 : index
    %c0_0 = arith.constant 0 : index
    %0 = vector.load %arg1[%c0, %c0_0] : memref<8x288xf32, #tpu.memory_space<vmem>>, vector<8x288xf32>
    %c0_1 = arith.constant 0 : index
    %c0_2 = arith.constant 0 : index
    %1 = vector.load %arg2[%c0_1, %c0_2] : memref<288x576xf32, #tpu.memory_space<vmem>>, vector<288x576xf32>
    %cst = arith.constant dense<0.000000e+00> : vector<8x576xf32>
    %2 = tpu.matmul %0, %1, %cst {dimension_numbers = #tpu.dot_dimension_numbers<[1], [0], [0], [1], [0, 0, 1, 1], [], []>} : vector<8x288xf32>, vector<288x576xf32>, vector<8x576xf32> -> vector<8x576xf32>
    %c0_3 = arith.constant 0 : index
    %c0_4 = arith.constant 0 : index
    %3 = vector.load %arg3[%c0_3, %c0_4] : memref<1x576xf32, #tpu.memory_space<vmem>>, vector<1x576xf32>
    %4 = vector.broadcast %3 : vector<1x576xf32> to vector<8x576xf32>
    %5 = arith.addf %2, %4 : vector<8x576xf32>
    %6 = vector.extract_strided_slice %5 {offsets = [0, 0], sizes = [8, 288], strides = [1, 1]} : vector<8x576xf32> to vector<8x288xf32>
    %7 = vector.extract_strided_slice %5 {offsets = [0, 288], sizes = [8, 288], strides = [1, 1]} : vector<8x576xf32> to vector<8x288xf32>
    %8 = vector.extract_strided_slice %0 {offsets = [0, 0], sizes = [8, 32], strides = [1, 1]} : vector<8x288xf32> to vector<8x32xf32>
    %c0_5 = arith.constant 0 : index
    %c0_6 = arith.constant 0 : index
    %9 = vector.load %arg4[%c0_5, %c0_6] : memref<32x64xf32, #tpu.memory_space<vmem>>, vector<32x64xf32>
    %cst_7 = arith.constant dense<0.000000e+00> : vector<8x64xf32>
    %10 = tpu.matmul %8, %9, %cst_7 {dimension_numbers = #tpu.dot_dimension_numbers<[1], [0], [0], [1], [0, 0, 1, 1], [], []>} : vector<8x32xf32>, vector<32x64xf32>, vector<8x64xf32> -> vector<8x64xf32>
    %c0_8 = arith.constant 0 : index
    %c0_9 = arith.constant 0 : index
    %11 = vector.load %arg5[%c0_8, %c0_9] : memref<1x64xf32, #tpu.memory_space<vmem>>, vector<1x64xf32>
    %12 = vector.broadcast %11 : vector<1x64xf32> to vector<8x64xf32>
    %13 = arith.addf %10, %12 : vector<8x64xf32>
    %14 = vector.extract_strided_slice %13 {offsets = [0, 0], sizes = [8, 32], strides = [1, 1]} : vector<8x64xf32> to vector<8x32xf32>
    %15 = vector.extract_strided_slice %13 {offsets = [0, 32], sizes = [8, 32], strides = [1, 1]} : vector<8x64xf32> to vector<8x32xf32>
    %16 = tpu.concatenate %14, %14, %14, %14, %14, %14, %14, %14, %14 in 1 : vector<8x32xf32>, vector<8x32xf32>, vector<8x32xf32>, vector<8x32xf32>, vector<8x32xf32>, vector<8x32xf32>, vector<8x32xf32>, vector<8x32xf32>, vector<8x32xf32> -> vector<8x288xf32>
    %17 = arith.mulf %16, %6 : vector<8x288xf32>
    %c0_10 = arith.constant 0 : index
    %c0_11 = arith.constant 0 : index
    %18 = vector.load %arg6[%c0_10, %c0_11] : memref<288x36xf32, #tpu.memory_space<vmem>>, vector<288x36xf32>
    %cst_12 = arith.constant dense<0.000000e+00> : vector<8x36xf32>
    %19 = tpu.matmul %17, %18, %cst_12 {dimension_numbers = #tpu.dot_dimension_numbers<[1], [0], [0], [1], [0, 0, 1, 1], [], []>} : vector<8x288xf32>, vector<288x36xf32>, vector<8x36xf32> -> vector<8x36xf32>
    %20 = tpu.iota {dimensions = array<i32: 1>} : vector<8x36xi32>
    %c4_i32 = arith.constant 4 : i32
    %21 = vector.broadcast %c4_i32 : i32 to vector<8x36xi32>
    %22 = arith.cmpi slt, %20, %21 : vector<8x36xi32>
    %cst_13 = arith.constant -1.000000e+30 : f32
    %23 = vector.broadcast %cst_13 : f32 to vector<8x36xf32>
    %24 = arith.select %22, %23, %19 : vector<8x36xi1>, vector<8x36xf32>
    %25 = vector.extract_strided_slice %24 {offsets = [0, 0], sizes = [8, 4], strides = [1, 1]} : vector<8x36xf32> to vector<8x4xf32>
    %26 = vector.extract_strided_slice %24 {offsets = [0, 4], sizes = [8, 4], strides = [1, 1]} : vector<8x36xf32> to vector<8x4xf32>
    %27 = arith.maximumf %25, %26 : vector<8x4xf32>
    %28 = vector.extract_strided_slice %24 {offsets = [0, 8], sizes = [8, 4], strides = [1, 1]} : vector<8x36xf32> to vector<8x4xf32>
    %29 = arith.maximumf %27, %28 : vector<8x4xf32>
    %30 = vector.extract_strided_slice %24 {offsets = [0, 12], sizes = [8, 4], strides = [1, 1]} : vector<8x36xf32> to vector<8x4xf32>
    %31 = arith.maximumf %29, %30 : vector<8x4xf32>
    %32 = vector.extract_strided_slice %24 {offsets = [0, 16], sizes = [8, 4], strides = [1, 1]} : vector<8x36xf32> to vector<8x4xf32>
    %33 = arith.maximumf %31, %32 : vector<8x4xf32>
    %34 = vector.extract_strided_slice %24 {offsets = [0, 20], sizes = [8, 4], strides = [1, 1]} : vector<8x36xf32> to vector<8x4xf32>
    %35 = arith.maximumf %33, %34 : vector<8x4xf32>
    %36 = vector.extract_strided_slice %24 {offsets = [0, 24], sizes = [8, 4], strides = [1, 1]} : vector<8x36xf32> to vector<8x4xf32>
    %37 = arith.maximumf %35, %36 : vector<8x4xf32>
    %38 = vector.extract_strided_slice %24 {offsets = [0, 28], sizes = [8, 4], strides = [1, 1]} : vector<8x36xf32> to vector<8x4xf32>
    %39 = arith.maximumf %37, %38 : vector<8x4xf32>
    %40 = vector.extract_strided_slice %24 {offsets = [0, 32], sizes = [8, 4], strides = [1, 1]} : vector<8x36xf32> to vector<8x4xf32>
    %41 = arith.maximumf %39, %40 : vector<8x4xf32>
    %42 = tpu.concatenate %41, %41, %41, %41, %41, %41, %41, %41, %41 in 1 : vector<8x4xf32>, vector<8x4xf32>, vector<8x4xf32>, vector<8x4xf32>, vector<8x4xf32>, vector<8x4xf32>, vector<8x4xf32>, vector<8x4xf32>, vector<8x4xf32> -> vector<8x36xf32>
    %43 = arith.subf %24, %42 : vector<8x36xf32>
    %44 = math.exp %43 : vector<8x36xf32>
    %45 = vector.extract_strided_slice %44 {offsets = [0, 0], sizes = [8, 4], strides = [1, 1]} : vector<8x36xf32> to vector<8x4xf32>
    %46 = vector.extract_strided_slice %44 {offsets = [0, 4], sizes = [8, 4], strides = [1, 1]} : vector<8x36xf32> to vector<8x4xf32>
    %47 = arith.addf %45, %46 : vector<8x4xf32>
    %48 = vector.extract_strided_slice %44 {offsets = [0, 8], sizes = [8, 4], strides = [1, 1]} : vector<8x36xf32> to vector<8x4xf32>
    %49 = arith.addf %47, %48 : vector<8x4xf32>
    %50 = vector.extract_strided_slice %44 {offsets = [0, 12], sizes = [8, 4], strides = [1, 1]} : vector<8x36xf32> to vector<8x4xf32>
    %51 = arith.addf %49, %50 : vector<8x4xf32>
    %52 = vector.extract_strided_slice %44 {offsets = [0, 16], sizes = [8, 4], strides = [1, 1]} : vector<8x36xf32> to vector<8x4xf32>
    %53 = arith.addf %51, %52 : vector<8x4xf32>
    %54 = vector.extract_strided_slice %44 {offsets = [0, 20], sizes = [8, 4], strides = [1, 1]} : vector<8x36xf32> to vector<8x4xf32>
    %55 = arith.addf %53, %54 : vector<8x4xf32>
    %56 = vector.extract_strided_slice %44 {offsets = [0, 24], sizes = [8, 4], strides = [1, 1]} : vector<8x36xf32> to vector<8x4xf32>
    %57 = arith.addf %55, %56 : vector<8x4xf32>
    %58 = vector.extract_strided_slice %44 {offsets = [0, 28], sizes = [8, 4], strides = [1, 1]} : vector<8x36xf32> to vector<8x4xf32>
    %59 = arith.addf %57, %58 : vector<8x4xf32>
    %60 = vector.extract_strided_slice %44 {offsets = [0, 32], sizes = [8, 4], strides = [1, 1]} : vector<8x36xf32> to vector<8x4xf32>
    %61 = arith.addf %59, %60 : vector<8x4xf32>
    %62 = tpu.concatenate %61, %61, %61, %61, %61, %61, %61, %61, %61 in 1 : vector<8x4xf32>, vector<8x4xf32>, vector<8x4xf32>, vector<8x4xf32>, vector<8x4xf32>, vector<8x4xf32>, vector<8x4xf32>, vector<8x4xf32>, vector<8x4xf32> -> vector<8x36xf32>
    %63 = arith.divf %44, %62 : vector<8x36xf32>
    %c0_14 = arith.constant 0 : index
    %c0_15 = arith.constant 0 : index
    %64 = vector.load %arg7[%c0_14, %c0_15] : memref<36x288xf32, #tpu.memory_space<vmem>>, vector<36x288xf32>
    %cst_16 = arith.constant dense<0.000000e+00> : vector<8x288xf32>
    %65 = tpu.matmul %63, %64, %cst_16 {dimension_numbers = #tpu.dot_dimension_numbers<[1], [0], [0], [1], [0, 0, 1, 1], [], []>} : vector<8x36xf32>, vector<36x288xf32>, vector<8x288xf32> -> vector<8x288xf32>
    %66 = arith.mulf %65, %7 : vector<8x288xf32>
    %c0_17 = arith.constant 0 : index
    %c0_18 = arith.constant 0 : index
    %67 = vector.load %arg8[%c0_17, %c0_18] : memref<288x32xf32, #tpu.memory_space<vmem>>, vector<288x32xf32>
    %cst_19 = arith.constant dense<0.000000e+00> : vector<8x32xf32>
    %68 = tpu.matmul %66, %67, %cst_19 {dimension_numbers = #tpu.dot_dimension_numbers<[1], [0], [0], [1], [0, 0, 1, 1], [], []>} : vector<8x288xf32>, vector<288x32xf32>, vector<8x32xf32> -> vector<8x32xf32>
    %c0_20 = arith.constant 0 : index
    %c0_21 = arith.constant 0 : index
    %69 = vector.load %arg9[%c0_20, %c0_21] : memref<1x32xf32, #tpu.memory_space<vmem>>, vector<1x32xf32>
    %70 = vector.broadcast %69 : vector<1x32xf32> to vector<8x32xf32>
    %71 = arith.addf %68, %70 : vector<8x32xf32>
    %72 = tpu.concatenate %71, %15, %15, %15, %15, %15, %15, %15, %15 in 1 : vector<8x32xf32>, vector<8x32xf32>, vector<8x32xf32>, vector<8x32xf32>, vector<8x32xf32>, vector<8x32xf32>, vector<8x32xf32>, vector<8x32xf32>, vector<8x32xf32> -> vector<8x288xf32>
    %c0_22 = arith.constant 0 : index
    %c0_23 = arith.constant 0 : index
    %73 = vector.load %arg10[%c0_22, %c0_23] : memref<8x288xf32, #tpu.memory_space<vmem>>, vector<8x288xf32>
    tpu.vector_store %arg10[%c0_22, %c0_23], %72 {strides = array<i32>} : memref<8x288xf32, #tpu.memory_space<vmem>>, vector<8x288xf32>,
    %c0_24 = arith.constant 0 : index
    %c0_25 = arith.constant 0 : index
    %74 = vector.load %arg11[%c0_24, %c0_25] : memref<8x36xf32, #tpu.memory_space<vmem>>, vector<8x36xf32>
    tpu.vector_store %arg11[%c0_24, %c0_25], %63 {strides = array<i32>} : memref<8x36xf32, #tpu.memory_space<vmem>>, vector<8x36xf32>,
    return
  }
  func.func @transform_0(%arg0: i32) -> (i32, i32) {
    %c0_i32 = arith.constant 0 : i32
    %c0_i32_0 = arith.constant 0 : i32
    return %arg0, %c0_i32 : i32, i32
  }
  func.func @transform_1(%arg0: i32) -> (i32, i32) {
    %c0_i32 = arith.constant 0 : i32
    %c0_i32_0 = arith.constant 0 : i32
    %c0_i32_1 = arith.constant 0 : i32
    return %c0_i32, %c0_i32_0 : i32, i32
  }
  func.func @transform_2(%arg0: i32) -> (i32, i32) {
    %c0_i32 = arith.constant 0 : i32
    %c0_i32_0 = arith.constant 0 : i32
    %c0_i32_1 = arith.constant 0 : i32
    return %c0_i32, %c0_i32_0 : i32, i32
  }
  func.func @transform_3(%arg0: i32) -> (i32, i32) {
    %c0_i32 = arith.constant 0 : i32
    %c0_i32_0 = arith.constant 0 : i32
    %c0_i32_1 = arith.constant 0 : i32
    return %c0_i32, %c0_i32_0 : i32, i32
  }
  func.func @transform_4(%arg0: i32) -> (i32, i32) {
    %c0_i32 = arith.constant 0 : i32
    %c0_i32_0 = arith.constant 0 : i32
    %c0_i32_1 = arith.constant 0 : i32
    return %c0_i32, %c0_i32_0 : i32, i32
  }
  func.func @transform_5(%arg0: i32) -> (i32, i32) {
    %c0_i32 = arith.constant 0 : i32
    %c0_i32_0 = arith.constant 0 : i32
    %c0_i32_1 = arith.constant 0 : i32
    return %c0_i32, %c0_i32_0 : i32, i32
  }
  func.func @transform_6(%arg0: i32) -> (i32, i32) {
    %c0_i32 = arith.constant 0 : i32
    %c0_i32_0 = arith.constant 0 : i32
    %c0_i32_1 = arith.constant 0 : i32
    return %c0_i32, %c0_i32_0 : i32, i32
  }
  func.func @transform_7(%arg0: i32) -> (i32, i32) {
    %c0_i32 = arith.constant 0 : i32
    %c0_i32_0 = arith.constant 0 : i32
    %c0_i32_1 = arith.constant 0 : i32
    return %c0_i32, %c0_i32_0 : i32, i32
  }
  func.func @transform_8(%arg0: i32) -> (i32, i32) {
    %c0_i32 = arith.constant 0 : i32
    %c0_i32_0 = arith.constant 0 : i32
    %c0_i32_1 = arith.constant 0 : i32
    return %c0_i32, %c0_i32_0 : i32, i32
  }
  func.func @transform_9(%arg0: i32) -> (i32, i32) {
    %c0_i32 = arith.constant 0 : i32
    %c0_i32_0 = arith.constant 0 : i32
    return %arg0, %c0_i32 : i32, i32
  }
  func.func @transform_10(%arg0: i32) -> (i32, i32) {
    %c0_i32 = arith.constant 0 : i32
    %c0_i32_0 = arith.constant 0 : i32
    return %arg0, %c0_i32 : i32, i32
  }
}

</mosaic_0001>

<bundles_post_ra>
// kernel: tpu_custom_call.1
= control target key start
LH: loop header
LB: loop body
LE: loop exit
PB: predicated region body
PF: predicated region fallthrough
CT: control target
= control target key end

     0   :  { %16 = vsyncpa [#allocation3], 0  ;;  %s2704_s0 = inlined_call_operand.vmem [shape: f32[8,288], index: 0, kind: input, shape index: {}]   ;;  %s2705_s1 = inlined_call_operand.hbm [shape: f32[288,576], index: 1, kind: input, shape index: {}]   ;;  %s2706_s2 = inlined_call_operand.vmem [shape: f32[1,576], index: 2, kind: input, shape index: {}]   ;;  %s2707_s3 = inlined_call_operand.vmem [shape: f32[32,64], index: 3, kind: input, shape index: {}]   ;;  %s2708_s4 = inlined_call_operand.vmem [shape: f32[1,64], index: 4, kind: input, shape index: {}]   ;;  %s2709_s5 = inlined_call_operand.vmem [shape: f32[288,36], index: 5, kind: input, shape index: {}]   ;;  %s2710_s6 = inlined_call_operand.vmem [shape: f32[36,288], index: 6, kind: input, shape index: {}]   ;;  %s2711_s7 = inlined_call_operand.vmem [shape: f32[288,32], index: 7, kind: input, shape index: {}]   ;;  %s2712_s8 = inlined_call_operand.vmem [shape: f32[1,32], index: 8, kind: input, shape index: {}]   ;;  %s2713_s9 = inlined_call_operand.hbm [shape: f32[8,288], index: 9, kind: output, shape index: {0}]   ;;  %s2714_s10 = inlined_call_operand.hbm [shape: f32[8,36], index: 10, kind: output, shape index: {1}]  }
   0x1   :  { %17 = vsyncpa [#allocation4], 0 }
   0x2   :  { %18 = vsyncpa [#allocation7], 0  ;;  %s2117_s13 = smov [#allocation2]   ;;  %s2045_s17 = scalar_lea.hbm %s2705_s1, 23040 }
   0x3   :  { %s26_s14 = sshll.u32 %s2117_s13, 4  ;;  %p2046_p0 = scmp.ne.s32.totalorder %s2705_s1, %s2045_s17  ;;  %s27_s14 = int_to_ptr.vmem [resolvable:$true] %s26_s14 }
   0x4   :  { %p2049_p1 = scmp.lt.u32.totalorder %s2045_s17, %s2705_s1 }
   0x6   :  { %p2051_p2 = pnand %p2049_p1, %p2046_p0 }
   0x8   :  { %2054 = shalt.err (!%p2051_p2)
}
   0x9   :  { %s2055_s22 = scalar_lea.vmem %s27_s14, 23040  ;;  %p2060_p4 = scmp.lt.s32.totalorder %s27_s14, %s27_s14 }
   0xa   :  { %p2056_p3 = scmp.ne.s32.totalorder %s27_s14, %s2055_s22  ;;  %p2061_p5 = scmp.lt.s32.totalorder %s2055_s22, %s2055_s22 }
   0xc   :  { %p2062_p6 = por %p2061_p5, %p2060_p4 }
   0xe   :  { %p2063_p7 = pnand %p2062_p6, %p2056_p3 }
  0x10   :  { %2066 = shalt.err (!%p2063_p7)
}
  0x11   :  { %s2118_s23 = smov 640   ;;  %s2119_s24 = smov 40  }
  0x12   :  { %32 = dma.hbm_to_vmem [thread:$0]  %s2705_s1, 23040, %s27_s14, [#allocation3], %s2118_s23, %s2118_s23, %s2119_s24  }
  0x13   :  { %2111 = dma.done.wait [#allocation3], 23040  }
  0x14   :  { %2112 = vsyncadd [#allocation3], 4294944256  ;;  %v2120_v0 = vmov 0.0   ;;  %v54_v1 = vld [vmem:[#allocation2 + $0x8] sm:$0xff]  ;;  %v59_v2 = vld [vmem:[#allocation2 + $0x30] sm:$0xff]  ;;  %vm260_vm0 = vcmask 261120  }
  0x15   :  { %399 = vmatprep.mubr.f32.mxu1 %v2120_v0  ;;  %v214_v3 = vld [vmem:[#allocation2 + $0x508] sm:$0xff]  ;;  %v1730_v4 = vpack.c.bf16 %v59_v2, %v54_v1  ;;  %v219_v5 = vld [vmem:[#allocation2 + $0x530] sm:$0xff]  ;;  %v53_v6 = vld [vmem:[#allocation2] sm:$0xff]  ;;  %vm2122_vm1 = vmmov 0   ;;  %s2124_s24 = smov 32   ;;  %vm783_vm2 = vcmask 523264  }
  0x16   :  { %v58_v7 = vld [vmem:[#allocation2 + $0x28] sm:$0xff]  ;;  %v1794_v8 = vpack.c.bf16 %v219_v5, %v214_v3  ;;  %v213_v10 = vld [vmem:[#allocation2 + $0x500] sm:$0xff]  ;;  %v64_v12 = vld [vmem:[#allocation2 + $0x58] sm:$0xff]  ;;  %vm785_vm3 = vcmask 785408   ;;  %s2126_s25 = smov 120   ;;  %s2127_s26 = smov 124  }
  0x17   :  { %v1732_v9 = vpack.c.bf16 %v58_v7, %v53_v6  ;;  %v218_v11 = vld [vmem:[#allocation2 + $0x528] sm:$0xff]  ;;  %1731 = vmatprep.subr.bf16.mxu0 %v1730_v4  ;;  %v69_v14 = vld [vmem:[#allocation2 + $0x80] sm:$0xff]  ;;  %v224_v15 = vld [vmem:[#allocation2 + $0x558] sm:$0xff]  ;;  %s2128_s1 = smov 112   ;;  %s2129_s27 = smov 116   ;;  %vm1031_vm5 = vcmask 31744  }
  0x18   :  { %v1796_v13 = vpack.c.bf16 %v218_v11, %v213_v10  ;;  %v229_v16 = vld [vmem:[#allocation2 + $0x580] sm:$0xff]  ;;  %1795 = vmatprep.subr.bf16.mxu1 %v1794_v8  ;;  %v1734_v17 = vpack.c.bf16 %v69_v14, %v64_v12  ;;  %v63_v19 = vld [vmem:[#allocation2 + $0x50] sm:$0xff]  ;;  %v68_v20 = vld [vmem:[#allocation2 + $0x78] sm:$0xff]  ;;  %s2130_s28 = smov 104   ;;  %s2131_s29 = smov 108   ;;  %vm1033_vm6 = vcmask 64512  }
  0x19   :  { %1733 = vmatpush1.bf16.msra.mxu0 %v1732_v9  ;;  %v1798_v18 = vpack.c.bf16 %v229_v16, %v224_v15  ;;  %v223_v21 = vld [vmem:[#allocation2 + $0x550] sm:$0xff]  ;;  %v1736_v22 = vpack.c.bf16 %v68_v20, %v63_v19  ;;  %v228_v23 = vld [vmem:[#allocation2 + $0x578] sm:$0xff]  ;;  %v74_v24 = vld [vmem:[#allocation2 + $0xa8] sm:$0xff]  ;;  %s2132_s30 = smov 100   ;;  %s2134_s11 = smov 4   ;;  %vm1035_vm7 = vcmask 97280  }
  0x1a   :  { %1797 = vmatpush1.bf16.msra.mxu1 %v1796_v13  ;;  %v79_v25 = vld [vmem:[#allocation2 + $0xd0] sm:$0xff]  ;;  %1735 = vmatprep.subr.bf16.mxu0 %v1734_v17  ;;  %v1800_v26 = vpack.c.bf16 %v228_v23, %v223_v21  ;;  %v56_v28 = vld [vmem:[#allocation2 + $0x18] sm:$0xff]  ;;  %v61_v29 = vld [vmem:[#allocation2 + $0x40] sm:$0xff]  ;;  %s2136_s12 = smov 12   ;;  %s2137_s13 = smov 24   ;;  %vm1037_vm8 = vcmask 130048  }
  0x1b   :  { %1799 = vmatprep.subr.bf16.mxu1 %v1798_v18  ;;  %v1738_v27 = vpack.c.bf16 %v79_v25, %v74_v24  ;;  %v2213_v30 = vld [vmem:[%s2704_s0 + $0x10] sm:$0xff]  ;;  %v1802_v31 = vpack.c.bf16 %v61_v29, %v56_v28  ;;  %v73_v32 = vld [vmem:[#allocation2 + $0xa0] sm:$0xff]  ;;  %v78_v33 = vld [vmem:[#allocation2 + $0xc8] sm:$0xff]  ;;  %s2138_s14 = smov 20   ;;  %s2139_s15 = smov 28   ;;  %vm1039_vm9 = vcmask 162816  }
  0x1c   :  { %v55_v34 = vld [vmem:[#allocation2 + $0x10] sm:$0xff]  ;;  %v1740_v35 = vpack.c.bf16 %v78_v33, %v73_v32  ;;  %v60_v36 = vld [vmem:[#allocation2 + $0x38] sm:$0xff]  ;;  %v89_v38 = vld [vmem:[#allocation2 + $0x120] sm:$0xff]  ;;  %vm1041_vm10 = vcmask 195584   ;;  %vm1043_vm11 = vcmask 228352   ;;  %vm1136_vm12 = vcmask 1043456  }
  0x1d   :  { %1737 = vmatpush1.bf16.msra.mxu0 %v1736_v22  ;;  %v84_v37 = vld [vmem:[#allocation2 + $0xf8] sm:$0xff]  ;;  %v1804_v39 = vpack.c.bf16 %v60_v36, %v55_v34  ;;  %v66_v41 = vld [vmem:[#allocation2 + $0x68] sm:$0xff]  ;;  %v71_v42 = vld [vmem:[#allocation2 + $0x90] sm:$0xff]  ;;  %vm1132_vm13 = vcmask 293888  }
  0x1e   :  { %1801 = vmatpush1.bf16.msra.mxu1 %v1800_v26  ;;  %1739 = vmatprep.subr.bf16.mxu0 %v1738_v27  ;;  %v1742_v40 = vpack.c.bf16 %v89_v38, %v84_v37  ;;  %v83_v43 = vld [vmem:[#allocation2 + $0xf0] sm:$0xff]  ;;  %v1806_v44 = vpack.c.bf16 %v71_v42, %v66_v41  ;;  %v88_v45 = vld [vmem:[#allocation2 + $0x118] sm:$0xff]  ;;  %v65_v46 = vld [vmem:[#allocation2 + $0x60] sm:$0xff] }
  0x1f   :  { %1803 = vmatprep.subr.bf16.mxu1 %v1802_v31  ;;  %v70_v47 = vld [vmem:[#allocation2 + $0x88] sm:$0xff]  ;;  %v99_v49 = vld [vmem:[#allocation2 + $0x170] sm:$0xff]  ;;  %v76_v50 = vld [vmem:[#allocation2 + $0xb8] sm:$0xff]  ;;  %v1744_v51 = vpack.c.bf16 %v88_v45, %v83_v43 }
  0x20   :  { %v94_v48 = vld [vmem:[#allocation2 + $0x148] sm:$0xff]  ;;  %v81_v52 = vld [vmem:[#allocation2 + $0xe0] sm:$0xff]  ;;  %v1808_v53 = vpack.c.bf16 %v70_v47, %v65_v46  ;;  %v75_v57 = vld [vmem:[#allocation2 + $0xb0] sm:$0xff] }
  0x21   :  { %1529 = vmatmul.mubr.msk.f32.vlgmr.msra.gmra.mrb[0].mxu1 %vm260_vm0, %v2213_v30  ;;  %1741 = vmatpush1.bf16.msra.mxu0 %v1740_v35  ;;  %v1746_v54 = vpack.c.bf16 %v99_v49, %v94_v48  ;;  %v93_v55 = vld [vmem:[#allocation2 + $0x140] sm:$0xff]  ;;  %v98_v56 = vld [vmem:[#allocation2 + $0x168] sm:$0xff]  ;;  %v1810_v58 = vpack.c.bf16 %v81_v52, %v76_v50  ;;  %v80_v59 = vld [vmem:[#allocation2 + $0xd8] sm:$0xff] }
  0x22   :  { %1805 = vmatpush1.bf16.msra.mxu1 %v1804_v39  ;;  %1743 = vmatprep.subr.bf16.mxu0 %v1742_v40  ;;  %v104_v60 = vld [vmem:[#allocation2 + $0x198] sm:$0xff]  ;;  %v109_v61 = vld [vmem:[#allocation2 + $0x1c0] sm:$0xff]  ;;  %v86_v62 = vld [vmem:[#allocation2 + $0x108] sm:$0xff]  ;;  %v1748_v1 = vpack.c.bf16 %v98_v56, %v93_v55  ;;  %v1812_v2 = vpack.c.bf16 %v80_v59, %v75_v57 }
  0x23   :  { %1807 = vmatprep.subr.bf16.mxu1 %v1806_v44  ;;  %v91_v63 = vld [vmem:[#allocation2 + $0x130] sm:$0xff]  ;;  %v1750_v3 = vpack.c.bf16 %v109_v61, %v104_v60  ;;  %v108_v5 = vld [vmem:[#allocation2 + $0x1b8] sm:$0xff]  ;;  %v85_v6 = vld [vmem:[#allocation2 + $0x100] sm:$0xff] }
  0x24   :  { %v103_v4 = vld [vmem:[#allocation2 + $0x190] sm:$0xff]  ;;  %v1814_v7 = vpack.c.bf16 %v91_v63, %v86_v62  ;;  %v90_v8 = vld [vmem:[#allocation2 + $0x128] sm:$0xff]  ;;  %v96_v11 = vld [vmem:[#allocation2 + $0x158] sm:$0xff] }
  0x25   :  { %1745 = vmatpush1.bf16.msra.mxu0 %v1744_v51  ;;  %v114_v9 = vld [vmem:[#allocation2 + $0x1e8] sm:$0xff]  ;;  %v119_v10 = vld [vmem:[#allocation2 + $0x210] sm:$0xff]  ;;  %v101_v12 = vld [vmem:[#allocation2 + $0x180] sm:$0xff]  ;;  %v1752_v13 = vpack.c.bf16 %v108_v5, %v103_v4  ;;  %v1816_v14 = vpack.c.bf16 %v90_v8, %v85_v6 }
  0x26   :  { %1809 = vmatpush1.bf16.msra.mxu1 %v1808_v53  ;;  %1747 = vmatprep.subr.bf16.mxu0 %v1746_v54  ;;  %v1754_v15 = vpack.c.bf16 %v119_v10, %v114_v9  ;;  %v113_v16 = vld [vmem:[#allocation2 + $0x1e0] sm:$0xff]  ;;  %v118_v17 = vld [vmem:[#allocation2 + $0x208] sm:$0xff]  ;;  %v95_v18 = vld [vmem:[#allocation2 + $0x150] sm:$0xff]  ;;  %v1818_v19 = vpack.c.bf16 %v101_v12, %v96_v11 }
  0x27   :  { %1811 = vmatprep.subr.bf16.mxu1 %v1810_v58  ;;  %v100_v20 = vld [vmem:[#allocation2 + $0x178] sm:$0xff]  ;;  %v129_v22 = vld [vmem:[#allocation2 + $0x260] sm:$0xff]  ;;  %v106_v23 = vld [vmem:[#allocation2 + $0x1a8] sm:$0xff]  ;;  %v1756_v25 = vpack.c.bf16 %v118_v17, %v113_v16 }
  0x28   :  { %v124_v21 = vld [vmem:[#allocation2 + $0x238] sm:$0xff]  ;;  %v111_v24 = vld [vmem:[#allocation2 + $0x1d0] sm:$0xff]  ;;  %v1820_v26 = vpack.c.bf16 %v100_v20, %v95_v18  ;;  %v105_v31 = vld [vmem:[#allocation2 + $0x1a0] sm:$0xff] }
  0x29   :  { %1749 = vmatpush1.bf16.msra.mxu0 %v1748_v1  ;;  %v1758_v27 = vpack.c.bf16 %v129_v22, %v124_v21  ;;  %v123_v28 = vld [vmem:[#allocation2 + $0x230] sm:$0xff]  ;;  %v128_v29 = vld [vmem:[#allocation2 + $0x258] sm:$0xff]  ;;  %v1822_v32 = vpack.c.bf16 %v111_v24, %v106_v23  ;;  %v110_v33 = vld [vmem:[#allocation2 + $0x1c8] sm:$0xff] }
  0x2a   :  { %1813 = vmatpush1.bf16.msra.mxu1 %v1812_v2  ;;  %1751 = vmatprep.subr.bf16.mxu0 %v1750_v3  ;;  %v134_v34 = vld [vmem:[#allocation2 + $0x288] sm:$0xff]  ;;  %v139_v35 = vld [vmem:[#allocation2 + $0x2b0] sm:$0xff]  ;;  %v116_v36 = vld [vmem:[#allocation2 + $0x1f8] sm:$0xff]  ;;  %v1760_v38 = vpack.c.bf16 %v128_v29, %v123_v28  ;;  %v1824_v39 = vpack.c.bf16 %v110_v33, %v105_v31 }
  0x2b   :  { %1815 = vmatprep.subr.bf16.mxu1 %v1814_v7  ;;  %v121_v37 = vld [vmem:[#allocation2 + $0x220] sm:$0xff]  ;;  %v1762_v40 = vpack.c.bf16 %v139_v35, %v134_v34  ;;  %v138_v42 = vld [vmem:[#allocation2 + $0x2a8] sm:$0xff]  ;;  %v115_v43 = vld [vmem:[#allocation2 + $0x1f0] sm:$0xff] }
  0x2c   :  { %v133_v41 = vld [vmem:[#allocation2 + $0x280] sm:$0xff]  ;;  %v1826_v44 = vpack.c.bf16 %v121_v37, %v116_v36  ;;  %v120_v45 = vld [vmem:[#allocation2 + $0x218] sm:$0xff]  ;;  %v126_v48 = vld [vmem:[#allocation2 + $0x248] sm:$0xff] }
  0x2d   :  { %1753 = vmatpush1.bf16.msra.mxu0 %v1752_v13  ;;  %v144_v46 = vld [vmem:[#allocation2 + $0x2d8] sm:$0xff]  ;;  %v149_v47 = vld [vmem:[#allocation2 + $0x300] sm:$0xff]  ;;  %v131_v49 = vld [vmem:[#allocation2 + $0x270] sm:$0xff]  ;;  %v1764_v50 = vpack.c.bf16 %v138_v42, %v133_v41  ;;  %v1828_v51 = vpack.c.bf16 %v120_v45, %v115_v43 }
  0x2e   :  { %1817 = vmatpush1.bf16.msra.mxu1 %v1816_v14  ;;  %1755 = vmatprep.subr.bf16.mxu0 %v1754_v15  ;;  %v1766_v52 = vpack.c.bf16 %v149_v47, %v144_v46  ;;  %v143_v53 = vld [vmem:[#allocation2 + $0x2d0] sm:$0xff]  ;;  %v148_v54 = vld [vmem:[#allocation2 + $0x2f8] sm:$0xff]  ;;  %v125_v55 = vld [vmem:[#allocation2 + $0x240] sm:$0xff]  ;;  %v1830_v56 = vpack.c.bf16 %v131_v49, %v126_v48 }
  0x2f   :  { %1819 = vmatprep.subr.bf16.mxu1 %v1818_v19  ;;  %v130_v57 = vld [vmem:[#allocation2 + $0x268] sm:$0xff]  ;;  %v159_v59 = vld [vmem:[#allocation2 + $0x350] sm:$0xff]  ;;  %v136_v60 = vld [vmem:[#allocation2 + $0x298] sm:$0xff]  ;;  %v1768_v62 = vpack.c.bf16 %v148_v54, %v143_v53 }
  0x30   :  { %v154_v58 = vld [vmem:[#allocation2 + $0x328] sm:$0xff]  ;;  %v141_v61 = vld [vmem:[#allocation2 + $0x2c0] sm:$0xff]  ;;  %v1832_v63 = vpack.c.bf16 %v130_v57, %v125_v55  ;;  %v135_v4 = vld [vmem:[#allocation2 + $0x290] sm:$0xff] }
  0x31   :  { %1757 = vmatpush1.bf16.msra.mxu0 %v1756_v25  ;;  %v1770_v1 = vpack.c.bf16 %v159_v59, %v154_v58  ;;  %v153_v2 = vld [vmem:[#allocation2 + $0x320] sm:$0xff]  ;;  %v158_v3 = vld [vmem:[#allocation2 + $0x348] sm:$0xff]  ;;  %v1834_v5 = vpack.c.bf16 %v141_v61, %v136_v60  ;;  %v140_v6 = vld [vmem:[#allocation2 + $0x2b8] sm:$0xff] }
  0x32   :  { %1821 = vmatpush1.bf16.msra.mxu1 %v1820_v26  ;;  %1759 = vmatprep.subr.bf16.mxu0 %v1758_v27  ;;  %v164_v7 = vld [vmem:[#allocation2 + $0x378] sm:$0xff]  ;;  %v169_v8 = vld [vmem:[#allocation2 + $0x3a0] sm:$0xff]  ;;  %v146_v9 = vld [vmem:[#allocation2 + $0x2e8] sm:$0xff]  ;;  %v1772_v11 = vpack.c.bf16 %v158_v3, %v153_v2  ;;  %v1836_v12 = vpack.c.bf16 %v140_v6, %v135_v4 }
  0x33   :  { %1823 = vmatprep.subr.bf16.mxu1 %v1822_v32  ;;  %v151_v10 = vld [vmem:[#allocation2 + $0x310] sm:$0xff]  ;;  %v1774_v13 = vpack.c.bf16 %v169_v8, %v164_v7  ;;  %v168_v15 = vld [vmem:[#allocation2 + $0x398] sm:$0xff]  ;;  %v145_v16 = vld [vmem:[#allocation2 + $0x2e0] sm:$0xff] }
  0x34   :  { %v163_v14 = vld [vmem:[#allocation2 + $0x370] sm:$0xff]  ;;  %v1838_v17 = vpack.c.bf16 %v151_v10, %v146_v9  ;;  %v150_v18 = vld [vmem:[#allocation2 + $0x308] sm:$0xff]  ;;  %v156_v21 = vld [vmem:[#allocation2 + $0x338] sm:$0xff] }
  0x35   :  { %1761 = vmatpush1.bf16.msra.mxu0 %v1760_v38  ;;  %v174_v19 = vld [vmem:[#allocation2 + $0x3c8] sm:$0xff]  ;;  %v179_v20 = vld [vmem:[#allocation2 + $0x3f0] sm:$0xff]  ;;  %v161_v22 = vld [vmem:[#allocation2 + $0x360] sm:$0xff]  ;;  %v1776_v24 = vpack.c.bf16 %v168_v15, %v163_v14  ;;  %v1840_v25 = vpack.c.bf16 %v150_v18, %v145_v16 }
  0x36   :  { %1825 = vmatpush1.bf16.msra.mxu1 %v1824_v39  ;;  %1763 = vmatprep.subr.bf16.mxu0 %v1762_v40  ;;  %v2220_v23 = vld [vmem:[%s2704_s0 + $0x8] sm:$0xff]  ;;  %v1778_v26 = vpack.c.bf16 %v179_v20, %v174_v19  ;;  %v173_v27 = vld [vmem:[#allocation2 + $0x3c0] sm:$0xff]  ;;  %v155_v29 = vld [vmem:[#allocation2 + $0x330] sm:$0xff]  ;;  %v1842_v31 = vpack.c.bf16 %v161_v22, %v156_v21 }
  0x37   :  { %1827 = vmatprep.subr.bf16.mxu1 %v1826_v44  ;;  %328 = vmatprep.mubr.f32.mxu0 %v2220_v23  ;;  %v178_v28 = vld [vmem:[#allocation2 + $0x3e8] sm:$0xff]  ;;  %v160_v32 = vld [vmem:[#allocation2 + $0x358] sm:$0xff]  ;;  %v189_v34 = vld [vmem:[#allocation2 + $0x440] sm:$0xff] }
  0x38   :  { %v184_v33 = vld [vmem:[#allocation2 + $0x418] sm:$0xff]  ;;  %470 = vmatprep.mubr.f32.mxu1 %v2220_v23  ;;  %v166_v35 = vld [vmem:[#allocation2 + $0x388] sm:$0xff]  ;;  %v171_v36 = vld [vmem:[#allocation2 + $0x3b0] sm:$0xff]  ;;  %v1780_v37 = vpack.c.bf16 %v178_v28, %v173_v27  ;;  %v1844_v38 = vpack.c.bf16 %v160_v32, %v155_v29 }
  0x39   :  { %1765 = vmatpush1.bf16.msra.mxu0 %v1764_v50  ;;  %v1782_v39 = vpack.c.bf16 %v189_v34, %v184_v33  ;;  %v183_v40 = vld [vmem:[#allocation2 + $0x410] sm:$0xff]  ;;  %v188_v41 = vld [vmem:[#allocation2 + $0x438] sm:$0xff]  ;;  %v165_v42 = vld [vmem:[#allocation2 + $0x380] sm:$0xff]  ;;  %v1846_v43 = vpack.c.bf16 %v171_v36, %v166_v35 }
  0x3a   :  { %1829 = vmatpush1.bf16.msra.mxu1 %v1828_v51  ;;  %1767 = vmatprep.subr.bf16.mxu0 %v1766_v52  ;;  %v170_v44 = vld [vmem:[#allocation2 + $0x3a8] sm:$0xff]  ;;  %v199_v46 = vld [vmem:[#allocation2 + $0x490] sm:$0xff]  ;;  %v176_v47 = vld [vmem:[#allocation2 + $0x3d8] sm:$0xff]  ;;  %v1784_v49 = vpack.c.bf16 %v188_v41, %v183_v40 }
  0x3b   :  { %1831 = vmatprep.subr.bf16.mxu1 %v1830_v56  ;;  %v194_v45 = vld [vmem:[#allocation2 + $0x468] sm:$0xff]  ;;  %v181_v48 = vld [vmem:[#allocation2 + $0x400] sm:$0xff]  ;;  %v1848_v50 = vpack.c.bf16 %v170_v44, %v165_v42  ;;  %v175_v54 = vld [vmem:[#allocation2 + $0x3d0] sm:$0xff] }
  0x3c   :  { %v1786_v51 = vpack.c.bf16 %v199_v46, %v194_v45  ;;  %v193_v52 = vld [vmem:[#allocation2 + $0x460] sm:$0xff]  ;;  %v198_v53 = vld [vmem:[#allocation2 + $0x488] sm:$0xff]  ;;  %v1850_v55 = vpack.c.bf16 %v181_v48, %v176_v47  ;;  %v180_v56 = vld [vmem:[#allocation2 + $0x3f8] sm:$0xff] }
  0x3d   :  { %1769 = vmatpush1.bf16.msra.mxu0 %v1768_v62  ;;  %v204_v57 = vld [vmem:[#allocation2 + $0x4b8] sm:$0xff]  ;;  %v209_v58 = vld [vmem:[#allocation2 + $0x4e0] sm:$0xff]  ;;  %v186_v59 = vld [vmem:[#allocation2 + $0x428] sm:$0xff]  ;;  %v1788_v61 = vpack.c.bf16 %v198_v53, %v193_v52  ;;  %v1852_v62 = vpack.c.bf16 %v180_v56, %v175_v54 }
  0x3e   :  { %1833 = vmatpush1.bf16.msra.mxu1 %v1832_v63  ;;  %1771 = vmatprep.subr.bf16.mxu0 %v1770_v1  ;;  %v191_v60 = vld [vmem:[#allocation2 + $0x450] sm:$0xff]  ;;  %v1790_v63 = vpack.c.bf16 %v209_v58, %v204_v57  ;;  %v208_v2 = vld [vmem:[#allocation2 + $0x4d8] sm:$0xff]  ;;  %v185_v3 = vld [vmem:[#allocation2 + $0x420] sm:$0xff] }
  0x3f   :  { %1835 = vmatprep.subr.bf16.mxu1 %v1834_v5  ;;  %v203_v1 = vld [vmem:[#allocation2 + $0x4b0] sm:$0xff]  ;;  %v1854_v4 = vpack.c.bf16 %v191_v60, %v186_v59  ;;  %v190_v5 = vld [vmem:[#allocation2 + $0x448] sm:$0xff]  ;;  %v137_v6 = vld [vmem:[#allocation2 + $0x2a0] sm:$0xff] }
  0x40   :  { %v142_v7 = vld [vmem:[#allocation2 + $0x2c8] sm:$0xff]  ;;  %v196_v8 = vld [vmem:[#allocation2 + $0x478] sm:$0xff]  ;;  %v201_v9 = vld [vmem:[#allocation2 + $0x4a0] sm:$0xff]  ;;  %v1792_v10 = vpack.c.bf16 %v208_v2, %v203_v1 }
  0x41   :  { %1773 = vmatpush1.bf16.msra.mxu0 %v1772_v11  ;;  %v1856_v11 = vpack.c.bf16 %v190_v5, %v185_v3  ;;  %v57_v14 = vld [vmem:[#allocation2 + $0x20] sm:$0xff]  ;;  %v62_v15 = vld [vmem:[#allocation2 + $0x48] sm:$0xff]  ;;  %v1858_v16 = vpack.c.bf16 %v201_v9, %v196_v8  ;;  %v147_v18 = vld [vmem:[#allocation2 + $0x2f0] sm:$0xff] }
  0x42   :  { %1837 = vmatpush1.bf16.msra.mxu1 %v1836_v12  ;;  %1775 = vmatprep.subr.bf16.mxu0 %v1774_v13  ;;  %v1874_v12 = vpack.c.bf16 %v142_v7, %v137_v6  ;;  %v195_v13 = vld [vmem:[#allocation2 + $0x470] sm:$0xff]  ;;  %v152_v19 = vld [vmem:[#allocation2 + $0x318] sm:$0xff]  ;;  %v206_v20 = vld [vmem:[#allocation2 + $0x4c8] sm:$0xff] }
  0x43   :  { %1839 = vmatprep.subr.bf16.mxu1 %v1838_v17  ;;  %v200_v17 = vld [vmem:[#allocation2 + $0x498] sm:$0xff]  ;;  %v211_v21 = vld [vmem:[#allocation2 + $0x4f0] sm:$0xff]  ;;  %v2227_v22 = vld [vmem:[%s2704_s0] sm:$0xff]  ;;  %s2135_s0 = smov 16  }
  0x44   :  { %v205_v27 = vld [vmem:[#allocation2 + $0x4c0] sm:$0xff]  ;;  %v67_v28 = vld [vmem:[#allocation2 + $0x70] sm:$0xff]  ;;  %v72_v29 = vld [vmem:[#allocation2 + $0x98] sm:$0xff] }
  0x45   :  { %1777 = vmatpush1.bf16.msra.mxu0 %v1776_v24  ;;  %v1876_v24 = vpack.c.bf16 %v62_v15, %v57_v14  ;;  %v210_v32 = vld [vmem:[#allocation2 + $0x4e8] sm:$0xff]  ;;  %v157_v33 = vld [vmem:[#allocation2 + $0x340] sm:$0xff]  ;;  %v216_v35 = vld [vmem:[#allocation2 + $0x518] sm:$0xff] }
  0x46   :  { %1841 = vmatpush1.bf16.msra.mxu1 %v1840_v25  ;;  %1779 = vmatprep.subr.bf16.mxu0 %v1778_v26  ;;  %v1860_v25 = vpack.c.bf16 %v200_v17, %v195_v13  ;;  %v1878_v26 = vpack.c.bf16 %v152_v19, %v147_v18  ;;  %v162_v34 = vld [vmem:[#allocation2 + $0x368] sm:$0xff]  ;;  %v221_v36 = vld [vmem:[#allocation2 + $0x540] sm:$0xff]  ;;  %v215_v40 = vld [vmem:[#allocation2 + $0x510] sm:$0xff] }
  0x47   :  { %1843 = vmatprep.subr.bf16.mxu1 %v1842_v31  ;;  %v1862_v31 = vpack.c.bf16 %v211_v21, %v206_v20  ;;  %v77_v41 = vld [vmem:[#allocation2 + $0xc0] sm:$0xff]  ;;  %v82_v42 = vld [vmem:[#allocation2 + $0xe8] sm:$0xff]  ;;  %v220_v44 = vld [vmem:[#allocation2 + $0x538] sm:$0xff] }
  0x48   :  { %v167_v45 = vld [vmem:[#allocation2 + $0x390] sm:$0xff]  ;;  %v172_v46 = vld [vmem:[#allocation2 + $0x3b8] sm:$0xff]  ;;  %v226_v47 = vld [vmem:[#allocation2 + $0x568] sm:$0xff] }
  0x49   :  { %1781 = vmatpush1.bf16.msra.mxu0 %v1780_v37  ;;  %v1880_v37 = vpack.c.bf16 %v72_v29, %v67_v28  ;;  %v231_v48 = vld [vmem:[#allocation2 + $0x590] sm:$0xff]  ;;  %v92_v53 = vld [vmem:[#allocation2 + $0x138] sm:$0xff]  ;;  %v177_v56 = vld [vmem:[#allocation2 + $0x3e0] sm:$0xff] }
  0x4a   :  { %1845 = vmatpush1.bf16.msra.mxu1 %v1844_v38  ;;  %1783 = vmatprep.subr.bf16.mxu0 %v1782_v39  ;;  %v1864_v38 = vpack.c.bf16 %v210_v32, %v205_v27  ;;  %v1882_v39 = vpack.c.bf16 %v162_v34, %v157_v33  ;;  %v87_v52 = vld [vmem:[#allocation2 + $0x110] sm:$0xff]  ;;  %v1870_v54 = vpack.c.bf16 %v231_v48, %v226_v47  ;;  %v182_v57 = vld [vmem:[#allocation2 + $0x408] sm:$0xff]  ;;  %v192_v3 = vld [vmem:[#allocation2 + $0x458] sm:$0xff] }
  0x4b   :  { %1847 = vmatprep.subr.bf16.mxu1 %v1846_v43  ;;  %v1866_v43 = vpack.c.bf16 %v221_v36, %v216_v35  ;;  %v1888_v58 = vpack.c.bf16 %v92_v53, %v87_v52  ;;  %v1890_v60 = vpack.c.bf16 %v182_v57, %v177_v56  ;;  %v222_v1 = vld [vmem:[#allocation2 + $0x548] sm:$0xff]  ;;  %v187_v2 = vld [vmem:[#allocation2 + $0x430] sm:$0xff]  ;;  %v112_v8 = vld [vmem:[#allocation2 + $0x1d8] sm:$0xff] }
  0x4c   :  { %v1894_v6 = vpack.c.bf16 %v192_v3, %v187_v2  ;;  %v107_v7 = vld [vmem:[#allocation2 + $0x1b0] sm:$0xff]  ;;  %v202_v13 = vld [vmem:[#allocation2 + $0x4a8] sm:$0xff]  ;;  %v117_v17 = vld [vmem:[#allocation2 + $0x200] sm:$0xff] }
  0x4d   :  { %1785 = vmatpush1.bf16.msra.mxu0 %v1784_v49  ;;  %v1884_v49 = vpack.c.bf16 %v82_v42, %v77_v41  ;;  %v227_v9 = vld [vmem:[#allocation2 + $0x570] sm:$0xff]  ;;  %v1896_v14 = vpack.c.bf16 %v112_v8, %v107_v7  ;;  %v122_v18 = vld [vmem:[#allocation2 + $0x228] sm:$0xff]  ;;  %v688_v19 = vld [vmem:[%s2707_s3] sm:$0xff] }
  0x4e   :  { %1849 = vmatpush1.bf16.msra.mxu1 %v1848_v50  ;;  %1787 = vmatprep.subr.bf16.mxu0 %v1786_v51  ;;  %v1868_v50 = vpack.c.bf16 %v220_v44, %v215_v40  ;;  %v225_v51 = vld [vmem:[#allocation2 + $0x560] sm:$0xff]  ;;  %v689_v20 = vld [vmem:[%s2707_s3 + $0x8] sm:$0xff]  ;;  %v207_v21 = vld [vmem:[#allocation2 + $0x4d0] sm:$0xff] }
  0x4f   :  { %1851 = vmatprep.subr.bf16.mxu1 %v1850_v55  ;;  %v230_v55 = vld [vmem:[#allocation2 + $0x588] sm:$0xff]  ;;  %v127_v28 = vld [vmem:[#allocation2 + $0x250] sm:$0xff]  ;;  %v132_v29 = vld [vmem:[#allocation2 + $0x278] sm:$0xff] }
  0x50   :  { %v1872_v59 = vpack.c.bf16 %v230_v55, %v225_v51  ;;  %v691_v32 = vld [vmem:[%s2707_s3 + $0x18] sm:$0xff]  ;;  %v1904_v33 = vpack.c.bf16 %v132_v29, %v127_v28  ;;  %v823_v35 = vld [vmem:[%s2709_s5 + $0x108] sm:$0xff]  ;;  %v790_v41 = vld [vmem:[%s2709_s5] sm:$0xff] }
  0x51   :  { %1789 = vmatpush1.bf16.msra.mxu0 %v1788_v61  ;;  %v97_v61 = vld [vmem:[#allocation2 + $0x160] sm:$0xff]  ;;  %v807_v40 = vld [vmem:[%s2709_s5 + $0x88] sm:$0xff]  ;;  %v808_v44 = vld [vmem:[%s2709_s5 + $0x90] sm:$0xff] }
  0x52   :  { %1853 = vmatpush1.bf16.msra.mxu1 %v1852_v62  ;;  %1791 = vmatprep.subr.bf16.mxu0 %v1790_v63  ;;  %v102_v62 = vld [vmem:[#allocation2 + $0x188] sm:$0xff]  ;;  %v217_v63 = vld [vmem:[#allocation2 + $0x520] sm:$0xff]  ;;  %v792_v48 = vld [vmem:[%s2709_s5 + $0x10] sm:$0xff] }
  0x53   :  { %1855 = vmatprep.subr.bf16.mxu1 %v1854_v4  ;;  %v1892_v4 = vpack.c.bf16 %v102_v62, %v97_v61  ;;  %v1907_v5 = vpack.c.bf16 %v222_v1, %v217_v63  ;;  %v794_v53 = vld [vmem:[%s2709_s5 + $0x20] sm:$0xff]  ;;  %v812_v55 = vld [vmem:[%s2709_s5 + $0xb0] sm:$0xff]  ;;  %v813_v56 = vld [vmem:[%s2709_s5 + $0xb8] sm:$0xff] }
  0x54   :  { %v814_v61 = vld [vmem:[%s2709_s5 + $0xc0] sm:$0xff]  ;;  %v815_v62 = vld [vmem:[%s2709_s5 + $0xc8] sm:$0xff]  ;;  %v800_v8 = vld [vmem:[%s2709_s5 + $0x50] sm:$0xff] }
  0x55   :  { %1793 = vmatpush1.bf16.msra.mxu0 %v1792_v10  ;;  %v2121_v10 = vmov 0.0|0.0   ;;  %v1934_v1 = vpack.c.bf16 %v815_v62, %v814_v61  ;;  %v798_v2 = vld [vmem:[%s2709_s5 + $0x40] sm:$0xff]  ;;  %v799_v3 = vld [vmem:[%s2709_s5 + $0x48] sm:$0xff] }
  0x56   :  { %1857 = vmatpush1.bf16.msra.mxu1 %v1856_v11  ;;  %1875 = vmatprep.subr.bf16.mxu0 %v1874_v12  ;;  %v232_v11 = vld [vmem:[#allocation2 + $0x598] sm:$0xff]  ;;  %v197_v12 = vld [vmem:[#allocation2 + $0x480] sm:$0xff] }
  0x57   :  { %1859 = vmatprep.subr.bf16.mxu1 %v1858_v16  ;;  %v1910_v15 = vpack.c.bf16 %v232_v11, %v227_v9  ;;  %v1898_v16 = vpack.c.bf16 %v202_v13, %v197_v12  ;;  %v801_v9 = vld [vmem:[%s2709_s5 + $0x58] sm:$0xff] }
  0x58   :  { %329 = vmatmul.mubr.f32.vlgmr.msra.gmra.mrb[0].mxu0 %v2227_v22  ;;  %v1940_v11 = vpack.c.bf16 %v801_v9, %v800_v8 }
  0x59   :  { %1877 = vmatpush3.bf16.msra.mxu0 %v1876_v24  ;;  %612 = vmatprep.mubr.f32.mxu0 %v2220_v23  ;;  %v1886_v23 = vpack.c.bf16 %v172_v46, %v167_v45  ;;  %v212_v24 = vld [vmem:[#allocation2 + $0x4f8] sm:$0xff] }
  0x5a   :  { %1861 = vmatpush1.bf16.msra.mxu1 %v1860_v25  ;;  %1879 = vmatprep.subr.bf16.mxu0 %v1878_v26  ;;  %v1900_v25 = vpack.c.bf16 %v122_v18, %v117_v17  ;;  %v1913_v26 = vpack.c.bf16 %v689_v20, %v688_v19  ;;  %v1902_v27 = vpack.c.bf16 %v212_v24, %v207_v21  ;;  %v809_v45 = vld [vmem:[%s2709_s5 + $0x98] sm:$0xff]  ;;  %v2355_v17 = vld [vmem:[%s2706_s2] sm:$0x1f]  ;;  %s2133_s2 = smov 8  }
  0x5b   :  { %1863 = vmatprep.subr.bf16.mxu1 %v1862_v31  ;;  %v690_v31 = vld [vmem:[%s2707_s3 + $0x10] sm:$0xff]  ;;  %v1922_v47 = vpack.c.bf16 %v809_v45, %v808_v44 }
  0x5c   :  { %v1916_v34 = vpack.c.bf16 %v691_v32, %v690_v31  ;;  %v818_v32 = vld [vmem:[%s2709_s5 + $0xe0] sm:$0xff] }
  0x5d   :  { %1881 = vmatpush3.bf16.msra.mxu0 %v1880_v37  ;;  %v824_v37 = vld [vmem:[%s2709_s5 + $0x110] sm:$0xff] }
  0x5e   :  { %1865 = vmatpush1.bf16.msra.mxu1 %v1864_v38  ;;  %1883 = vmatprep.subr.bf16.mxu0 %v1882_v39  ;;  %v806_v39 = vld [vmem:[%s2709_s5 + $0x80] sm:$0xff] }
  0x5f   :  { %1867 = vmatprep.subr.bf16.mxu1 %v1866_v43  ;;  %v1918_v42 = vpack.c.bf16 %v807_v40, %v806_v39  ;;  %v791_v43 = vld [vmem:[%s2709_s5 + $0x8] sm:$0xff] }
  0x60   :  { %v1920_v46 = vpack.c.bf16 %v791_v43, %v790_v41  ;;  %v805_v43 = vld [vmem:[%s2709_s5 + $0x78] sm:$0xff] }
  0x61   :  { %471 = vmatmul.mubr.f32.vlgmr.msra.gmra.mrb[2].mxu1 %v2227_v22  ;;  %1885 = vmatpush3.bf16.msra.mxu0 %v1884_v49  ;;  %v793_v49 = vld [vmem:[%s2709_s5 + $0x18] sm:$0xff] }
  0x62   :  { %1869 = vmatpush1.bf16.msra.mxu1 %v1868_v50  ;;  %1887 = vmatprep.subr.bf16.mxu0 %v1886_v23  ;;  %v810_v50 = vld [vmem:[%s2709_s5 + $0xa0] sm:$0xff]  ;;  %v811_v23 = vld [vmem:[%s2709_s5 + $0xa8] sm:$0xff]  ;;  %v1924_v51 = vpack.c.bf16 %v793_v49, %v792_v48 }
  0x63   :  { %1871 = vmatprep.subr.bf16.mxu1 %v1870_v54  ;;  %541 = vmatprep.mubr.f32.mxu1 %v2120_v0  ;;  %v1926_v52 = vpack.c.bf16 %v811_v23, %v810_v50  ;;  %v795_v54 = vld [vmem:[%s2709_s5 + $0x28] sm:$0xff] }
  0x64   :  { %v1928_v57 = vpack.c.bf16 %v795_v54, %v794_v53 }
  0x65   :  { %1889 = vmatpush3.bf16.msra.mxu0 %v1888_v58  ;;  %v1930_v58 = vpack.c.bf16 %v813_v56, %v812_v55 }
  0x66   :  { %1873 = vmatpush1.bf16.msra.mxu1 %v1872_v59  ;;  %1891 = vmatprep.subr.bf16.mxu0 %v1890_v60  ;;  %v796_v59 = vld [vmem:[%s2709_s5 + $0x30] sm:$0xff]  ;;  %v797_v60 = vld [vmem:[%s2709_s5 + $0x38] sm:$0xff] }
  0x67   :  { %1906 = vmatprep.subr.bf16.mxu1 %v2121_v10  ;;  %v1932_v63 = vpack.c.bf16 %v797_v60, %v796_v59 }
  0x69   :  { %1530 = vmatmul.mubr.msk.f32.vlgmr.msra.gmra.mrb[2].mxu1 %vm260_vm0, %v2213_v30  ;;  %1893 = vmatpush3.bf16.msra.mxu0 %v1892_v4  ;;  %v816_v4 = vld [vmem:[%s2709_s5 + $0xd0] sm:$0xff] }
  0x6a   :  { %1908 = vmatpush3.bf16.msra.mxu1 %v1907_v5  ;;  %1895 = vmatprep.subr.bf16.mxu0 %v1894_v6  ;;  %v817_v5 = vld [vmem:[%s2709_s5 + $0xd8] sm:$0xff]  ;;  %v1936_v6 = vpack.c.bf16 %v799_v3, %v798_v2 }
  0x6b   :  { %1909 = vmatprep.subr.bf16.mxu1 %v2121_v10  ;;  %1681 = vmatprep.mubr.msk.f32.mxu1 %vm2122_vm1, %v2120_v0  ;;  %v1938_v7 = vpack.c.bf16 %v817_v5, %v816_v4 }
  0x6d   :  { %1897 = vmatpush3.bf16.msra.mxu0 %v1896_v14  ;;  %v235_v14 = vlaneseq }
  0x6e   :  { %1911 = vmatpush3.bf16.msra.mxu1 %v1910_v15  ;;  %1899 = vmatprep.subr.bf16.mxu0 %v1898_v16 }
  0x6f   :  { %1912 = vmatprep.subr.bf16.mxu1 %v2121_v10  ;;  %v2349_v15 = vshrl.u32 %v235_v14, 7  ;;  %v970_v8 = vand.u32 127, %v235_v14 }
  0x71   :  { %1682 = vmatmul.mubr.msk.f32.vlgmr.msra.gmra.mrb[4].mxu1 %vm260_vm0, %v2213_v30  ;;  %1901 = vmatpush3.bf16.msra.mxu0 %v1900_v25  ;;  %v822_v30 = vld [vmem:[%s2709_s5 + $0x100] sm:$0xff]  ;;  %v237_v16 = vsub.s32 0, %v2349_v15  ;;  %v241_v18 = vsub.s32 1, %v2349_v15  ;;  %v245_v39 = vsub.s32 2, %v2349_v15  ;;  %v253_v45 = vsub.s32 4, %v2349_v15 }
  0x72   :  { %1914 = vmatpush3.bf16.msra.mxu1 %v1913_v26  ;;  %1903 = vmatprep.subr.bf16.mxu0 %v1902_v27  ;;  %v1951_v36 = vpack.c.bf16 %v823_v35, %v822_v30  ;;  %v802_v30 = vld [vmem:[%s2709_s5 + $0x60] sm:$0xff]  ;;  %v803_v35 = vld [vmem:[%s2709_s5 + $0x68] sm:$0xff]  ;;  %vm971_vm4 = vcmp.lt.s32.totalorder %v970_v8, 4 }
  0x73   :  { %1915 = vmatprep.subr.bf16.mxu1 %v2121_v10  ;;  %1692 = vmatprep.mubr.msk.f32.mxu1 %vm2122_vm1, %v2120_v0  ;;  %v238_v19 = vrot.slane %v2355_v17, %v237_v16  ;;  %v242_v20 = vrot.slane %v2355_v17, %v241_v18  ;;  %v254_v49 = vrot.slane %v2355_v17, %v253_v45 }
  0x75   :  { %1905 = vmatpush3.bf16.msra.mxu0 %v1904_v33  ;;  %v819_v33 = vld [vmem:[%s2709_s5 + $0xe8] sm:$0xff] }
  0x76   :  { %1917 = vmatpush3.bf16.msra.mxu1 %v1916_v34  ;;  %1950 = vmatprep.subr.bf16.mxu0 %v2121_v10  ;;  %v1942_v34 = vpack.c.bf16 %v819_v33, %v818_v32 }
  0x77   :  { %1919 = vmatprep.subr.bf16.mxu1 %v1918_v42  ;;  %v804_v42 = vld [vmem:[%s2709_s5 + $0x70] sm:$0xff] }
  0x78   :  { %613 = vmatmul.mubr.f32.vlgmr.msra.gmra.mrb[2].mxu0 %v2227_v22  ;;  %v1948_v44 = vpack.c.bf16 %v805_v43, %v804_v42 }
  0x79   :  { %1693 = vmatmul.mubr.msk.f32.vlgmr.msra.gmra.mrb[6].mxu1 %vm260_vm0, %v2227_v22  ;;  %1703 = vmatprep.mubr.msk.f32.mxu0 %vm2122_vm1, %v2120_v0  ;;  %v825_v22 = vld [vmem:[%s2709_s5 + $0x118] sm:$0xff] }
  0x7a   :  { %1952 = vmatpush3.bf16.msra.mxu0 %v1951_v36  ;;  %v1954_v38 = vpack.c.bf16 %v825_v22, %v824_v37  ;;  %1921 = vmatpush3.bf16.msra.mxu1 %v1920_v46  ;;  %v1944_v36 = vpack.c.bf16 %v803_v35, %v802_v30  ;;  %v820_v22 = vld [vmem:[%s2709_s5 + $0xf0] sm:$0xff]  ;;  %v246_v46 = vrot.slane %v2355_v17, %v245_v39 }
  0x7b   :  { %1953 = vmatprep.subr.bf16.mxu0 %v2121_v10  ;;  %1923 = vmatprep.subr.bf16.mxu1 %v1922_v47  ;;  %v1532_v47 = vld [vmem:[%s2708_s4] ss:$0 sm:$0xff]  ;;  %s2125_s4 = smov 64  }
  0x7e   :  { %1955 = vmatpush3.bf16.msra.mxu0 %v1954_v38  ;;  %1925 = vmatpush3.bf16.msra.mxu1 %v1924_v51  ;;  %v821_v38 = vld [vmem:[%s2709_s5 + $0xf8] sm:$0xff]  ;;  %s2123_s5 = smov 96  }
  0x7f   :  { %1927 = vmatprep.subr.bf16.mxu1 %v1926_v52  ;;  %v1946_v41 = vpack.c.bf16 %v821_v38, %v820_v22 }
  0x82   :  { %1929 = vmatpush3.bf16.msra.mxu1 %v1928_v57 }
  0x83   :  { %1931 = vmatprep.subr.bf16.mxu1 %v1930_v58 }
  0x86   :  { %1933 = vmatpush3.bf16.msra.mxu1 %v1932_v63 }
  0x87   :  { %1935 = vmatprep.subr.bf16.mxu1 %v1934_v1 }
  0x8a   :  { %1937 = vmatpush3.bf16.msra.mxu1 %v1936_v6 }
  0x8b   :  { %1939 = vmatprep.subr.bf16.mxu1 %v1938_v7 }
  0x8e   :  { %1941 = vmatpush3.bf16.msra.mxu1 %v1940_v11 }
  0x8f   :  { %1943 = vmatprep.subr.bf16.mxu1 %v1942_v34 }
  0x92   :  { %1945 = vmatpush3.bf16.msra.mxu1 %v1944_v36 }
  0x93   :  { %1947 = vmatprep.subr.bf16.mxu1 %v1946_v41 }
  0x96   :  { %1949 = vmatpush3.bf16.msra.mxu1 %v1948_v44 }
  0x97   :  { %1964 = vmatprep.subr.bf16.mxu1 %v2121_v10 }
  0xf4   :  { %v401_v12 = vpop.f32.mrb[0].mxu1 }
  0xf5   :  { %v403_v13 = vpop.f32.mrb[1].mxu1 }
 0x12b   :  { %v330_v21 = vpop.f32.mrb[0].mxu0 }
 0x12c   :  { %v331_v24 = vadd.f32 %v330_v21, %v238_v19  ;;  %v332_v25 = vpop.f32.mrb[1].mxu0 }
 0x12d   :  { %v333_v26 = vadd.f32 %v332_v25, %v242_v20 }
 0x12e   :  { %v402_v27 = vadd.f32 %v401_v12, %v331_v24 }
 0x12f   :  { %v404_v28 = vadd.f32 %v403_v13, %v333_v26 }
 0x13c   :  { %v543_v29 = vpop.f32.mrb[2].mxu1 }
 0x13d   :  { %v2360_v31 = vpop.f32.mrb[3].mxu1  ;;  %v2394_v51 = vadd.f32 %v543_v29, %v246_v46 }
 0x144   :  { %v684_v37 = vpop.f32.mrb[4].mxu1 }
 0x145   :  { %v1683_v40 = vpop.f32.mrb[5].mxu1 }
 0x14b   :  { %v1574_v48 = vpop.f32.mrb[2].mxu0 }
 0x14c   :  { %v768_v50 = vpop.f32.mrb[6].mxu1  ;;  %v1575_v23 = vpop.f32.mrb[3].mxu0 }
 0x14d   :  { %v2396_v52 = vadd.f32 %v1532_v47, %v768_v50  ;;  %v1576_v53 = vadd.f32 %v1575_v23, %v1574_v48  ;;  %v1694_v54 = vpop.f32.mrb[7].mxu1 }
 0x14f   :  { %v615_v55 = vadd.f32 %v1576_v53, %v254_v49  ;;  %779 = vrot.lane.b32.xlu1 %v2396_v52, %s2123_s5  ;;  %773 = vrot.lane.b32.xlu0 %v2396_v52, %s2124_s24  ;;  %v789_v56 = vmul.f32 %v2394_v51, %v2396_v52 }
 0x151   :  { %1704 = vmatmul.mubr.msk.f32.vlgmr.msra.gmra.mrb[4].mxu0 %vm260_vm0, %v789_v56  ;;  %v2405_v57 = vadd.f32 %v684_v37, %v615_v55 }
 0x152   :  { %1210 = vmatprep.mubr.f32.mxu0 %v2120_v0 }
 0x153   :  { %776 = vrot.lane.b32.xlu0 %v2396_v52, %s2125_s4 }
 0x1c1   :  { %v780_v58 = vpop.permute.xlu1 %779  ;;  %v2409_v59 = vpop.permute.xlu0 %773 }
 0x1c2   :  { %v1493_v60 = vsel %vm260_vm0, %v780_v58, %v2396_v52  ;;  %1498 = vst.msk [vmem:[#allocation5 + $0x10] sm:$0xff] %vm260_vm0, %v780_v58  ;;  %v782_v61 = vsel %vm260_vm0, %v2396_v52, %v2409_v59 }
 0x1c3   :  { %v1494_v62 = vsel %vm783_vm2, %v1493_v60, %v2409_v59 }
 0x1c5   :  { %v2419_v63 = vpop.permute.xlu0 %776 }
 0x1c6   :  { %v784_v1 = vsel %vm783_vm2, %v782_v61, %v2419_v63  ;;  %v1495_v2 = vsel %vm785_vm3, %v1494_v62, %v2419_v63 }
 0x1c7   :  { %1497 = vst [vmem:[#allocation5 + $0x8] sm:$0xff] %v1495_v2  ;;  %v786_v3 = vsel %vm785_vm3, %v784_v1, %v780_v58 }
 0x1c8   :  { %v787_v4 = vmul.f32 %v786_v3, %v402_v27  ;;  %v788_v5 = vmul.f32 %v786_v3, %v404_v28 }
 0x1ca   :  { %893 = vmatprep.mubr.f32.mxu1 %v788_v5 }
 0x1cb   :  { %894 = vmatmul.mubr.f32.vlgmr.msra.gmra.mrb[8].mxu1 %v787_v4 }
 0x1cc   :  { %1716 = vmatprep.mubr.msk.f32.mxu1 %vm2122_vm1, %v2120_v0 }
 0x224   :  { %v965_v6 = vpop.f32.mrb[4].mxu0 }
 0x225   :  { %v1705_v7 = vpop.f32.mrb[5].mxu0 }
 0x29e   :  { %v1619_v9 = vpop.f32.mrb[8].mxu1 }
 0x29f   :  { %v1620_v11 = vpop.f32.mrb[9].mxu1 }
 0x2a0   :  { %v1621_v12 = vadd.f32 %v1620_v11, %v1619_v9 }
 0x2a2   :  { %v966_v13 = vadd.f32 %v1621_v12, %v965_v6  ;;  %v1118_v12 = vld [vmem:[%s2710_s6 + $0x8] sm:$0xff] }
 0x2a4   :  { %v2429_v16 = vsel %vm971_vm4, -1e+30, %v966_v13  ;;  %v1121_v13 = vld [vmem:[%s2710_s6 + $0x20] sm:$0xff] }
 0x2a5   :  { %978 = vrot.lane.b32.xlu0 %v2429_v16, %s2126_s25  ;;  %974 = vrot.lane.b32.xlu1 %v2429_v16, %s2127_s26 }
 0x2a9   :  { %986 = vrot.lane.b32.xlu0 %v2429_v16, %s2128_s1  ;;  %982 = vrot.lane.b32.xlu1 %v2429_v16, %s2129_s27 }
 0x2ad   :  { %994 = vrot.lane.b32.xlu0 %v2429_v16, %s2130_s28  ;;  %990 = vrot.lane.b32.xlu1 %v2429_v16, %s2131_s29 }
 0x2b1   :  { %1002 = vrot.lane.b32.xlu0 %v2429_v16, %s2123_s5  ;;  %998 = vrot.lane.b32.xlu1 %v2429_v16, %s2132_s30 }
 0x317   :  { %v979_v14 = vpop.permute.xlu0 %978  ;;  %v975_v18 = vpop.permute.xlu1 %974 }
 0x318   :  { %v977_v19 = vmax.f32 %v2429_v16, %v975_v18  ;;  %v1120_v18 = vld [vmem:[%s2710_s6 + $0x18] sm:$0xff] }
 0x31a   :  { %v981_v20 = vmax.f32 %v977_v19, %v979_v14  ;;  %v1117_v14 = vld [vmem:[%s2710_s6] sm:$0xff]  ;;  %v1119_v19 = vld [vmem:[%s2710_s6 + $0x10] sm:$0xff] }
 0x31b   :  { %v987_v21 = vpop.permute.xlu0 %986  ;;  %v983_v24 = vpop.permute.xlu1 %982 }
 0x31c   :  { %v985_v25 = vmax.f32 %v981_v20, %v983_v24  ;;  %v1958_v20 = vpack.c.bf16 %v1120_v18, %v1117_v14  ;;  %v1326_v14 = vld [vmem:[%s2711_s7 + $0xb0] sm:$0xff]  ;;  %v1327_v18 = vld [vmem:[%s2711_s7 + $0xb8] sm:$0xff] }
 0x31e   :  { %v989_v26 = vmax.f32 %v985_v25, %v987_v21  ;;  %v1122_v21 = vld [vmem:[%s2710_s6 + $0x28] sm:$0xff]  ;;  %v1124_v25 = vld [vmem:[%s2710_s6 + $0x38] sm:$0xff] }
 0x31f   :  { %v995_v27 = vpop.permute.xlu0 %994  ;;  %v991_v28 = vpop.permute.xlu1 %990  ;;  %v1965_v24 = vpack.c.bf16 %v1122_v21, %v1119_v19  ;;  %v1310_v21 = vld [vmem:[%s2711_s7 + $0x30] sm:$0xff] }
 0x320   :  { %v993_v29 = vmax.f32 %v989_v26, %v991_v28  ;;  %v1127_v26 = vld [vmem:[%s2710_s6 + $0x50] sm:$0xff] }
 0x321   :  { %1966 = vmatpush3.bf16.msra.mxu1 %v1965_v24  ;;  %v1960_v28 = vpack.c.bf16 %v1127_v26, %v1124_v25  ;;  %v1328_v24 = vld [vmem:[%s2711_s7 + $0xc0] sm:$0xff] }
 0x322   :  { %v997_v32 = vmax.f32 %v993_v29, %v995_v27  ;;  %v249_v27 = vsub.s32 3, %v2349_v15  ;;  %v1123_v29 = vld [vmem:[%s2710_s6 + $0x30] sm:$0xff]  ;;  %1967 = vmatprep.subr.bf16.mxu1 %v2121_v10  ;;  %v1128_v15 = vld [vmem:[%s2710_s6 + $0x58] sm:$0xff] }
 0x323   :  { %v999_v33 = vpop.permute.xlu1 %998  ;;  %v1003_v30 = vpop.permute.xlu0 %1002 }
 0x324   :  { %v1001_v34 = vmax.f32 %v997_v32, %v999_v33  ;;  %v1126_v32 = vld [vmem:[%s2710_s6 + $0x48] sm:$0xff]  ;;  %v1125_v33 = vld [vmem:[%s2710_s6 + $0x40] sm:$0xff] }
 0x326   :  { %v1005_v35 = vmax.f32 %v1001_v34, %v1003_v30  ;;  %v1962_v34 = vpack.c.bf16 %v1126_v32, %v1123_v29  ;;  %v1968_v30 = vpack.c.bf16 %v1128_v15, %v1125_v33  ;;  %v1330_v29 = vld [vmem:[%s2711_s7 + $0xd0] sm:$0xff]  ;;  %v1331_v32 = vld [vmem:[%s2711_s7 + $0xd8] sm:$0xff] }
 0x327   :  { %v1314_v15 = vld [vmem:[%s2711_s7 + $0x50] sm:$0xff] }
 0x328   :  { %1010 = vrot.lane.b32.xlu0 %v1005_v35, %s2133_s2  ;;  %1007 = vrot.lane.b32.xlu1 %v1005_v35, %s2134_s11 }
 0x329   :  { %1969 = vmatpush3.bf16.msra.mxu1 %v1968_v30  ;;  %v1315_v30 = vld [vmem:[%s2711_s7 + $0x58] sm:$0xff] }
 0x32a   :  { %1714 = vmatprep.subr.mxu1 %v2120_v0 }
 0x32c   :  { %1016 = vrot.lane.b32.xlu0 %v1005_v35, %s2135_s0  ;;  %1013 = vrot.lane.b32.xlu1 %v1005_v35, %s2136_s12 }
 0x330   :  { %1022 = vrot.lane.b32.xlu0 %v1005_v35, %s2137_s13  ;;  %1019 = vrot.lane.b32.xlu1 %v1005_v35, %s2138_s14 }
 0x334   :  { %1028 = vrot.lane.b32.xlu0 %v1005_v35, %s2124_s24  ;;  %1025 = vrot.lane.b32.xlu1 %v1005_v35, %s2139_s15 }
 0x39a   :  { %v1011_v36 = vpop.permute.xlu0 %1010  ;;  %v1008_v37 = vpop.permute.xlu1 %1007 }
 0x39b   :  { %v1032_v22 = vsel %vm1031_vm5, %v1005_v35, %v1008_v37  ;;  %v1130_v35 = vld [vmem:[%s2710_s6 + $0x68] sm:$0xf]  ;;  %v1129_v37 = vld [vmem:[%s2710_s6 + $0x60] sm:$0xf] }
 0x39c   :  { %v1034_v39 = vsel %vm1033_vm6, %v1032_v22, %v1011_v36  ;;  %v250_v36 = vrot.slane %v2355_v17, %v249_v27  ;;  %v1131_v22 = vld [vmem:[%s2710_s6 + $0x70] sm:$0xf]  ;;  %v1320_v17 = vld [vmem:[%s2711_s7 + $0x80] sm:$0xff] }
 0x39d   :  { %1715 = vmatpush3.msk.msra.mxu1 %vm1136_vm12, %v1131_v22  ;;  %v1312_v27 = vld [vmem:[%s2711_s7 + $0x40] sm:$0xff] }
 0x39e   :  { %v1017_v38 = vpop.permute.xlu0 %1016  ;;  %v1014_v40 = vpop.permute.xlu1 %1013  ;;  %2002 = vmatprep.subr.bf16.mxu1 %v2121_v10 }
 0x39f   :  { %v1036_v41 = vsel %vm1035_vm7, %v1034_v39, %v1014_v40  ;;  %v1321_v39 = vld [vmem:[%s2711_s7 + $0x88] sm:$0xff] }
 0x3a0   :  { %v1038_v43 = vsel %vm1037_vm8, %v1036_v41, %v1017_v38  ;;  %v2013_v38 = vadd.f32 %v2360_v31, %v250_v36  ;;  %v1970_v40 = vpack.c.bf16 %v1321_v39, %v1320_v17  ;;  %v1333_v36 = vld [vmem:[%s2711_s7 + $0xe8] sm:$0xff] }
 0x3a1   :  { %v1317_v17 = vld [vmem:[%s2711_s7 + $0x68] sm:$0xff] }
 0x3a2   :  { %v1023_v42 = vpop.permute.xlu0 %1022  ;;  %v1020_v44 = vpop.permute.xlu1 %1019 }
 0x3a3   :  { %v1040_v45 = vsel %vm1039_vm9, %v1038_v43, %v1020_v44 }
 0x3a4   :  { %v1042_v47 = vsel %vm1041_vm10, %v1040_v45, %v1023_v42 }
 0x3a6   :  { %v1029_v46 = vpop.permute.xlu0 %1028  ;;  %v1026_v48 = vpop.permute.xlu1 %1025 }
 0x3a7   :  { %v1044_v49 = vsel %vm1043_vm11, %v1042_v47, %v1026_v48 }
 0x3a8   :  { %v1045_v50 = vsel %vm260_vm0, %v1044_v49, %v1029_v46 }
 0x3a9   :  { %v1046_v23 = vsub.f32 %v2429_v16, %v1045_v50  ;;  %v1956_v16 = vpack.c.bf16 %v1121_v13, %v1118_v12  ;;  %v1308_v13 = vld [vmem:[%s2711_s7 + $0x20] sm:$0xff] }
 0x3ab   :  { %v1047_v53 = vmul.f32 1.442695, %v1046_v23  ;;  %1957 = vmatprep.subr.bf16.mxu0 %v1956_v16  ;;  %v1309_v16 = vld [vmem:[%s2711_s7 + $0x28] sm:$0xff] }
 0x3ac   :  { %1959 = vmatpush1.bf16.msra.mxu0 %v1958_v20  ;;  %v1980_v19 = vpack.c.bf16 %v1309_v16, %v1308_v13  ;;  %v1982_v20 = vpack.c.bf16 %v1327_v18, %v1326_v14 }
 0x3ad   :  { %2041 = vpow2.f32 %v1047_v53  ;;  %1961 = vmatprep.subr.bf16.mxu0 %v1960_v28  ;;  %v1313_v28 = vld [vmem:[%s2711_s7 + $0x48] sm:$0xff] }
 0x3ae   :  { %v1988_v33 = vpack.c.bf16 %v1313_v28, %v1312_v27 }
 0x3b0   :  { %1963 = vmatpush1.bf16.msra.mxu0 %v1962_v34  ;;  %v1990_v34 = vpack.c.bf16 %v1331_v32, %v1330_v29 }
 0x3b1   :  { %1535 = vmatprep.subr.msk.mxu0 %vm1136_vm12, %v1130_v35  ;;  %v1332_v35 = vld [vmem:[%s2711_s7 + $0xe0] sm:$0xff] }
 0x3b2   :  { %v1994_v22 = vpack.c.bf16 %v1333_v36, %v1332_v35 }
 0x3b4   :  { %1536 = vmatpush1.msk.msra.mxu0 %vm1136_vm12, %v1129_v37  ;;  %v1992_v37 = vpack.c.bf16 %v1315_v30, %v1314_v15 }
 0x3b5   :  { %1971 = vmatprep.subr.bf16.mxu0 %v1970_v40  ;;  %v1338_v40 = vld [vmem:[%s2711_s7 + $0x110] sm:$0xff] }
 0x3b7   :  { %v2465_v54 = vpop.eup %2041 }
 0x3b8   :  { %1054 = vrot.lane.b32.xlu0 %v2465_v54, %s2126_s25  ;;  %1050 = vrot.lane.b32.xlu1 %v2465_v54, %s2127_s26 }
 0x3bc   :  { %1062 = vrot.lane.b32.xlu0 %v2465_v54, %s2128_s1  ;;  %1058 = vrot.lane.b32.xlu1 %v2465_v54, %s2129_s27 }
 0x3c0   :  { %1070 = vrot.lane.b32.xlu0 %v2465_v54, %s2130_s28  ;;  %1066 = vrot.lane.b32.xlu1 %v2465_v54, %s2131_s29 }
 0x3c4   :  { %1078 = vrot.lane.b32.xlu0 %v2465_v54, %s2123_s5  ;;  %1074 = vrot.lane.b32.xlu1 %v2465_v54, %s2132_s30 }
 0x42a   :  { %v1055_v55 = vpop.permute.xlu0 %1054  ;;  %v1051_v56 = vpop.permute.xlu1 %1050 }
 0x42b   :  { %v1053_v58 = vadd.f32 %v2465_v54, %v1051_v56  ;;  %v1304_v56 = vld [vmem:[%s2711_s7] sm:$0xff] }
 0x42d   :  { %v1057_v60 = vadd.f32 %v1055_v55, %v1053_v58  ;;  %v1305_v58 = vld [vmem:[%s2711_s7 + $0x8] sm:$0xff] }
 0x42e   :  { %v1063_v61 = vpop.permute.xlu0 %1062  ;;  %v1059_v62 = vpop.permute.xlu1 %1058 }
 0x42f   :  { %v1061_v1 = vadd.f32 %v1059_v62, %v1057_v60  ;;  %v1336_v60 = vld [vmem:[%s2711_s7 + $0x100] sm:$0xff]  ;;  %v1322_v62 = vld [vmem:[%s2711_s7 + $0x90] sm:$0xff] }
 0x431   :  { %v1065_v2 = vadd.f32 %v1063_v61, %v1061_v1  ;;  %v1337_v61 = vld [vmem:[%s2711_s7 + $0x108] sm:$0xff]  ;;  %v1323_v1 = vld [vmem:[%s2711_s7 + $0x98] sm:$0xff] }
 0x432   :  { %v1071_v3 = vpop.permute.xlu0 %1070  ;;  %v1067_v4 = vpop.permute.xlu1 %1066 }
 0x433   :  { %v1069_v5 = vadd.f32 %v1067_v4, %v1065_v2  ;;  %v2003_v4 = vpack.c.bf16 %v1337_v61, %v1336_v60 }
 0x435   :  { %v1073_v6 = vadd.f32 %v1071_v3, %v1069_v5  ;;  %v1972_v3 = vpack.c.bf16 %v1305_v58, %v1304_v56 }
 0x436   :  { %v1075_v7 = vpop.permute.xlu1 %1074  ;;  %v1079_v9 = vpop.permute.xlu0 %1078 }
 0x437   :  { %v1077_v8 = vadd.f32 %v1075_v7, %v1073_v6  ;;  %v1974_v6 = vpack.c.bf16 %v1323_v1, %v1322_v62  ;;  %v1306_v7 = vld [vmem:[%s2711_s7 + $0x10] sm:$0xff] }
 0x439   :  { %v1081_v11 = vadd.f32 %v1079_v9, %v1077_v8  ;;  %v1307_v8 = vld [vmem:[%s2711_s7 + $0x18] sm:$0xff]  ;;  %v1324_v9 = vld [vmem:[%s2711_s7 + $0xa0] sm:$0xff] }
 0x43b   :  { %1086 = vrot.lane.b32.xlu0 %v1081_v11, %s2133_s2  ;;  %1083 = vrot.lane.b32.xlu1 %v1081_v11, %s2134_s11 }
 0x43f   :  { %1092 = vrot.lane.b32.xlu0 %v1081_v11, %s2135_s0  ;;  %1089 = vrot.lane.b32.xlu1 %v1081_v11, %s2136_s12 }
 0x443   :  { %1098 = vrot.lane.b32.xlu0 %v1081_v11, %s2137_s13  ;;  %1095 = vrot.lane.b32.xlu1 %v1081_v11, %s2138_s14 }
 0x447   :  { %1104 = vrot.lane.b32.xlu0 %v1081_v11, %s2124_s24  ;;  %1101 = vrot.lane.b32.xlu1 %v1081_v11, %s2139_s15 }
 0x44b   :  { %1294 = vrot.lane.b32.xlu0 %v2405_v57, %s2123_s5  ;;  %1292 = vrot.lane.b32.xlu1 %v2013_v38, %s2123_s5  ;;  %v1316_v38 = vld [vmem:[%s2711_s7 + $0x60] sm:$0xff] }
 0x44c   :  { %v1996_v39 = vpack.c.bf16 %v1317_v17, %v1316_v38 }
 0x44f   :  { %1290 = vrot.lane.b32.xlu1 %v2394_v51, %s2123_s5 }
 0x4ad   :  { %v1087_v31 = vpop.permute.xlu0 %1086  ;;  %v1084_v41 = vpop.permute.xlu1 %1083 }
 0x4ae   :  { %v1107_v42 = vsel %vm1031_vm5, %v1081_v11, %v1084_v41  ;;  %v1325_v11 = vld [vmem:[%s2711_s7 + $0xa8] sm:$0xff] }
 0x4af   :  { %v1108_v44 = vsel %vm1033_vm6, %v1107_v42, %v1087_v31  ;;  %v1978_v12 = vpack.c.bf16 %v1325_v11, %v1324_v9  ;;  %v1339_v31 = vld [vmem:[%s2711_s7 + $0x118] sm:$0xff]  ;;  %v1334_v42 = vld [vmem:[%s2711_s7 + $0xf0] sm:$0xff] }
 0x4b0   :  { %v2006_v41 = vpack.c.bf16 %v1339_v31, %v1338_v40 }
 0x4b1   :  { %v1093_v43 = vpop.permute.xlu0 %1092  ;;  %v1090_v45 = vpop.permute.xlu1 %1089 }
 0x4b2   :  { %v1109_v46 = vsel %vm1035_vm7, %v1108_v44, %v1090_v45  ;;  %v1318_v45 = vld [vmem:[%s2711_s7 + $0x70] sm:$0xff] }
 0x4b3   :  { %v1110_v48 = vsel %vm1037_vm8, %v1109_v46, %v1093_v43  ;;  %v1335_v43 = vld [vmem:[%s2711_s7 + $0xf8] sm:$0xff] }
 0x4b4   :  { %v1998_v44 = vpack.c.bf16 %v1335_v43, %v1334_v42  ;;  %v1319_v46 = vld [vmem:[%s2711_s7 + $0x78] sm:$0xff] }
 0x4b5   :  { %v1099_v47 = vpop.permute.xlu0 %1098  ;;  %v1096_v57 = vpop.permute.xlu1 %1095 }
 0x4b6   :  { %v1111_v49 = vsel %vm1039_vm9, %v1110_v48, %v1096_v57 }
 0x4b7   :  { %v1112_v23 = vsel %vm1041_vm10, %v1111_v49, %v1099_v47  ;;  %v2000_v47 = vpack.c.bf16 %v1319_v46, %v1318_v45 }
 0x4b9   :  { %v1105_v50 = vpop.permute.xlu0 %1104  ;;  %v1102_v51 = vpop.permute.xlu1 %1101 }
 0x4ba   :  { %v1113_v53 = vsel %vm1043_vm11, %v1112_v23, %v1102_v51 }
 0x4bb   :  { %v1114_v55 = vsel %vm260_vm0, %v1113_v53, %v1105_v50 }
 0x4bc   :  { %2043 = vrcp.f32 %v1114_v55 }
 0x4bd   :  { %v1293_v48 = vpop.permute.xlu1 %1292  ;;  %v1295_v57 = vpop.permute.xlu0 %1294 }
 0x4be   :  { %v1297_v55 = vsel %vm785_vm3, %v1293_v48, %v1295_v57 }
 0x4c1   :  { %v1291_v49 = vpop.permute.xlu1 %1290 }
 0x4c2   :  { %v1296_v58 = vsel %vm785_vm3, %v1291_v49, %v1293_v48 }
 0x4c6   :  { %v2044_v2 = vpop.eup %2043 }
 0x4c7   :  { %v1116_v5 = vmul.f32 %v2044_v2, %v2465_v54  ;;  %v1976_v54 = vpack.c.bf16 %v1307_v8, %v1306_v7 }
 0x4c9   :  { %1537 = vmatmul.mubr.msk.f32.vlgmr.msra.gmra.mrb[6].mxu0 %vm1132_vm13, %v1116_v5  ;;  %1499 = vst.msk [vmem:[#allocation6] sm:$0xff] %vm1132_vm13, %v1116_v5  ;;  %1717 = vmatmul.mubr.msk.f32.vlgmr.msra.gmra.mrb[10].mxu1 %vm1132_vm13, %v1116_v5 }
 0x4ca   :  { %1973 = vmatpush3.bf16.msra.mxu0 %v1972_v3  ;;  %2004 = vmatpush3.bf16.msra.mxu1 %v2003_v4 }
 0x4cb   :  { %1975 = vmatprep.subr.bf16.mxu0 %v1974_v6  ;;  %2005 = vmatprep.subr.bf16.mxu1 %v2121_v10  ;;  %v1311_v10 = vld [vmem:[%s2711_s7 + $0x38] sm:$0xff] }
 0x4cc   :  { %1727 = vmatprep.mubr.msk.f32.mxu1 %vm2122_vm1, %v2120_v0  ;;  %v1329_v0 = vld [vmem:[%s2711_s7 + $0xc8] sm:$0xff]  ;;  %v1984_v25 = vpack.c.bf16 %v1311_v10, %v1310_v21  ;;  %s2140_s7 = smov [#allocation6]  }
 0x4cd   :  { %v1986_v26 = vpack.c.bf16 %v1329_v0, %v1328_v24  ;;  %s1516_s16 = sshll.u32 %s2140_s7, 4  ;;  %s1517_s16 = int_to_ptr.vmem [resolvable:$true] %s1516_s16 }
 0x4ce   :  { %1977 = vmatpush3.bf16.msra.mxu0 %v1976_v54  ;;  %2007 = vmatpush3.bf16.msra.mxu1 %v2006_v41  ;;  %s2067_s17 = scalar_lea.vmem %s1517_s16, 128  ;;  %p2072_p9 = scmp.lt.s32.totalorder %s1517_s16, %s1517_s16 }
 0x4cf   :  { %1979 = vmatprep.subr.bf16.mxu0 %v1978_v12  ;;  %p2068_p8 = scmp.ne.s32.totalorder %s1517_s16, %s2067_s17  ;;  %p2073_p10 = scmp.lt.s32.totalorder %s2067_s17, %s2067_s17 }
 0x4d1   :  { %p2074_p11 = por %p2073_p10, %p2072_p9 }
 0x4d2   :  { %1981 = vmatpush3.bf16.msra.mxu0 %v1980_v19 }
 0x4d3   :  { %1983 = vmatprep.subr.bf16.mxu0 %v1982_v20  ;;  %p2075_p12 = pnand %p2074_p11, %p2068_p8 }
 0x4d6   :  { %1985 = vmatpush3.bf16.msra.mxu0 %v1984_v25 }
 0x4d7   :  { %1987 = vmatprep.subr.bf16.mxu0 %v1986_v26 }
 0x4da   :  { %1989 = vmatpush3.bf16.msra.mxu0 %v1988_v33 }
 0x4db   :  { %1991 = vmatprep.subr.bf16.mxu0 %v1990_v34 }
 0x4de   :  { %1993 = vmatpush3.bf16.msra.mxu0 %v1992_v37 }
 0x4df   :  { %1995 = vmatprep.subr.bf16.mxu0 %v1994_v22 }
 0x4e2   :  { %1997 = vmatpush3.bf16.msra.mxu0 %v1996_v39 }
 0x4e3   :  { %1999 = vmatprep.subr.bf16.mxu0 %v1998_v44 }
 0x4e6   :  { %2001 = vmatpush3.bf16.msra.mxu0 %v2000_v47 }
 0x59c   :  { %v1212_v50 = vpop.f32.mrb[6].mxu0  ;;  %v1283_v23 = vpop.f32.mrb[10].mxu1 }
 0x59d   :  { %v1303_v51 = vmul.f32 %v1295_v57, %v1283_v23  ;;  %v1214_v53 = vpop.f32.mrb[7].mxu0  ;;  %v1718_v56 = vpop.f32.mrb[11].mxu1  ;;  %v1301_v61 = vmul.f32 %v1296_v58, %v1212_v50 }
 0x59e   :  { %v1302_v60 = vmul.f32 %v1297_v55, %v1214_v53 }
 0x59f   :  { %1728 = vmatmul.mubr.msk.f32.vlgmr.msra.gmra.mrb[12].mxu1 %vm260_vm0, %v1303_v51 }
 0x5a0   :  { %1414 = vmatprep.mubr.f32.mxu0 %v1302_v60 }
 0x5a1   :  { %1415 = vmatmul.mubr.f32.vlgmr.msra.gmra.mrb[8].mxu0 %v1301_v61 }
 0x5a2   :  { %2078 = shalt.err (!%p2075_p12)
}
 0x5a3   :  { %s2079_s19 = scalar_lea.hbm %s2714_s10, 128 }
 0x5a4   :  { %p2080_p13 = scmp.ne.s32.totalorder %s2714_s10, %s2079_s19  ;;  %p2083_p0 = scmp.lt.u32.totalorder %s2079_s19, %s2714_s10 }
 0x5a6   :  { %p2085_p1 = pnand %p2083_p0, %p2080_p13 }
 0x5a8   :  { %2088 = shalt.err (!%p2085_p1)
}
 0x5a9   :  { %1519 = dma.vmem_to_hbm [thread:$0]  %s1517_s16, 128, %s2714_s10, [#allocation7]   ;;  %v1540_v3 = vld [vmem:[%s2712_s8] ss:$0 sm:$0xff] }
 0x5aa   :  { %s2141_s6 = smov [#allocation5]  }
 0x5ab   :  { %s1506_s5 = sshll.u32 %s2141_s6, 4  ;;  %s1507_s5 = int_to_ptr.vmem [resolvable:$true] %s1506_s5 }
 0x5ac   :  { %s2089_s10 = scalar_lea.vmem %s1507_s5, 384  ;;  %p2094_p3 = scmp.lt.s32.totalorder %s1507_s5, %s1507_s5 }
 0x5ad   :  { %p2090_p2 = scmp.ne.s32.totalorder %s1507_s5, %s2089_s10  ;;  %p2095_p4 = scmp.lt.s32.totalorder %s2089_s10, %s2089_s10 }
 0x5af   :  { %p2096_p5 = por %p2095_p4, %p2094_p3 }
 0x5b1   :  { %p2097_p6 = pnand %p2096_p5, %p2090_p2 }
 0x672   :  { %v1486_v62 = vpop.f32.mrb[12].mxu1 }
 0x673   :  { %v1729_v1 = vpop.f32.mrb[13].mxu1 }
 0x674   :  { %v1665_v2 = vpop.f32.mrb[8].mxu0 }
 0x675   :  { %v1666_v4 = vpop.f32.mrb[9].mxu0 }
 0x676   :  { %v1667_v5 = vadd.f32 %v1666_v4, %v1665_v2 }
 0x678   :  { %v1417_v6 = vadd.f32 %v1667_v5, %v1540_v3 }
 0x67a   :  { %v1487_v7 = vadd.f32 %v1486_v62, %v1417_v6 }
 0x67c   :  { %v1490_v8 = vsel %vm260_vm0, %v1487_v7, %v2396_v52 }
 0x67d   :  { %v1491_v9 = vsel %vm783_vm2, %v1490_v8, %v2409_v59 }
 0x67e   :  { %v1492_v11 = vsel %vm785_vm3, %v1491_v9, %v2419_v63 }
 0x67f   :  { %1496 = vst [vmem:[#allocation5] sm:$0xff] %v1492_v11 }
 0x680   :  { %2100 = shalt.err (!%p2097_p6)
}
 0x681   :  { %s2101_s15 = scalar_lea.hbm %s2713_s9, 384 }
 0x682   :  { %p2102_p7 = scmp.ne.s32.totalorder %s2713_s9, %s2101_s15  ;;  %p2105_p8 = scmp.lt.u32.totalorder %s2101_s15, %s2713_s9 }
 0x684   :  { %p2107_p9 = pnand %p2105_p8, %p2102_p7 }
 0x686   :  { %2110 = shalt.err (!%p2107_p9)
}
 0x687   :  { %1509 = dma.vmem_to_hbm [thread:$0]  %s1507_s5, 384, %s2713_s9, [#allocation4]  }
 0x688   :  { %2113 = dma.done.wait [#allocation4], 384  }
 0x689   :  { %2114 = vsyncadd [#allocation4], 4294966912 }
 0x68a   :  { %2115 = dma.done.wait [#allocation7], 128  }
 0x68b   :  { %2116 = vsyncadd [#allocation7], 4294967168 }
 0x68c   :  { %1526 = vsyncpa [#allocation3], 1 }
 0x68d   :  { %1527 = vsyncpa [#allocation4], 1 }
 0x68e   :  { %1528 = vsyncpa [#allocation7], 1 }

</bundles_post_ra>
